<compile_context>
chip_gen: v5e
topology: v5e:2x2
jax: 0.10.0
libtpu: 0.0.40
codegen_flags: <defaults>
</compile_context>

<pallas_src>
import functools
import math

import jax
import jax.numpy as jnp
from jax.experimental import pallas as pl
from jax.experimental.pallas import tpu as pltpu

_LN_EPS = 1e-5


def _gelu_exact(x):
    # nn.GELU() default = exact erf GELU (kept exact for PyTorch parity).
    return 0.5 * x * (1.0 + jax.lax.erf(x / math.sqrt(2.0)))


def _layernorm(x, gamma, beta):
    mu = jnp.mean(x, axis=-1, keepdims=True)
    var = jnp.mean((x - mu) ** 2, axis=-1, keepdims=True)
    return (x - mu) * jax.lax.rsqrt(var + _LN_EPS) * gamma + beta


def transformer_block_kernel(
    x_ref,
    ln1_g_ref, ln1_b_ref,
    w_qkv_ref, b_qkv_ref,
    w_out_ref, b_out_ref,
    ln2_g_ref, ln2_b_ref,
    w1_ref, b1_ref,
    w2_ref, b2_ref,
    *out_refs,
    num_heads, seq_len, need_weights,
):
    out_ref = out_refs[0]
    attn_w_ref = out_refs[1] if need_weights else None

    x = x_ref[...]                           # (bb*S, E) f32, bb batches stacked on rows
    N, E = x.shape
    S = seq_len
    bb = N // S
    H = num_heads
    hd = E // H
    bf16 = jnp.bfloat16

    # ---- hoisted parameter loads (no per-use re-broadcast) ----
    ln1_g = ln1_g_ref[...]
    ln1_b = ln1_b_ref[...]
    ln2_g = ln2_g_ref[...]
    ln2_b = ln2_b_ref[...]
    w_qkv = w_qkv_ref[...]                   # (E, 3E) bf16, Q columns pre-scaled by 1/sqrt(hd)
    b_qkv = b_qkv_ref[...]                   # (1, 3E) f32, Q part pre-scaled
    w_out = w_out_ref[...]                   # (E, E) bf16
    b_out = b_out_ref[...]                   # (1, E) f32
    w1 = w1_ref[...]                         # (E, M) bf16
    b1 = b1_ref[...]
    w2 = w2_ref[...]                         # (M, E) bf16
    b2 = b2_ref[...]

    # ---------------- LayerNorm 1 (f32) ----------------
    xn = _layernorm(x, ln1_g, ln1_b)

    # ---------------- Fused QKV projection: one lane-dense matmul ----------------
    qkv = jnp.dot(xn.astype(bf16), w_qkv,
                  preferred_element_type=jnp.float32) + b_qkv        # (bb*S, 3E) f32

    # Split into heads (static slices + stack -> (bb*H, S, hd)); cheap vs. H tiny matmuls.
    q_heads, k_heads, v_heads = [], [], []
    for b in range(bb):
        rows = slice(b * S, (b + 1) * S)
        for h in range(H):
            q_heads.append(qkv[rows, 0 * E + h * hd: 0 * E + (h + 1) * hd])
            k_heads.append(qkv[rows, 1 * E + h * hd: 1 * E + (h + 1) * hd])
            v_heads.append(qkv[rows, 2 * E + h * hd: 2 * E + (h + 1) * hd])
    q = jnp.stack(q_heads, axis=0).astype(bf16)                      # (bb*H, S, hd)
    k = jnp.stack(k_heads, axis=0).astype(bf16)
    v = jnp.stack(v_heads, axis=0).astype(bf16)

    # ---------------- Attention scores + softmax (f32) ----------------
    scores = jnp.einsum('nsd,ntd->nst', q, k,
                        preferred_element_type=jnp.float32)          # (bb*H, S, S)
    m = jnp.max(scores, axis=-1, keepdims=True)
    p = jnp.exp(scores - m)
    denom = jnp.sum(p, axis=-1, keepdims=True)
    # Exact normalization: rows of attn_w sum to 1 and the PV path uses the
    # same weights (review correctness concern about approx reciprocal).
    p = p / denom

    if need_weights:
        inv_h = 1.0 / H
        for b in range(bb):
            acc = p[b * H]
            for h in range(1, H):
                acc = acc + p[b * H + h]
            attn_w_ref[b] = acc * inv_h                              # (S, S) head-average

    # ---------------- PV, then fused output projection ----------------
    ctx = jnp.einsum('nst,ntd->nsd', p.astype(bf16), v,
                     preferred_element_type=jnp.float32)             # (bb*H, S, hd)

    # Re-assemble to a lane-dense (bb*S, E) tile: head-major columns per row
    # (PyTorch's concat order), batch-major rows.
    row_blocks = []
    for b in range(bb):
        row_blocks.append(
            jnp.concatenate([ctx[b * H + h] for h in range(H)], axis=-1))  # (S, E)
    ctx_cat = row_blocks[0] if bb == 1 else jnp.concatenate(row_blocks, axis=0)

    attn_out = jnp.dot(ctx_cat.astype(bf16), w_out,
                       preferred_element_type=jnp.float32) + b_out   # (bb*S, E)

    # residual 1
    x2 = attn_out + x

    # ---------------- LayerNorm 2 + MLP ----------------
    x2n = _layernorm(x2, ln2_g, ln2_b)
    h1 = jnp.dot(x2n.astype(bf16), w1, preferred_element_type=jnp.float32) + b1
    h1 = _gelu_exact(h1)
    # TODO(synk): dropout layers are identity here (inference); training-mode dropout not implemented.
    h2 = jnp.dot(h1.astype(bf16), w2, preferred_element_type=jnp.float32) + b2

    # residual 2
    out_ref[...] = h2 + x2


def transformer_block(x, params, num_heads, *, need_weights=True, batch_parallel=False):
    """x: (B, S, E) f32.  Returns (out (B,S,E), attn_w (B,S,S)) like the PyTorch module.

    batch_parallel=False (default): whole batch in one kernel invocation, grid=(1,)
      -> no serial-grid-step overhead on single-TC v5e/v6e.
    batch_parallel=True: grid=(B,) with "parallel" semantics for v7x's 2 TensorCores.
    """
    B, S, E = x.shape
    H = num_heads
    hd = E // H
    assert H * hd == E
    bf16 = jnp.bfloat16

    # ---- one-time weight prep (plain JAX, outside the kernel) ----
    # Fold the 1/sqrt(hd) attention scale into the Q columns of w_qkv / b_qkv.
    scale = 1.0 / math.sqrt(hd)
    scale_vec = jnp.concatenate(
        [jnp.full((1, E), scale, jnp.float32), jnp.ones((1, 2 * E), jnp.float32)], axis=1)
    w_qkv = (params["w_qkv"] * scale_vec).astype(bf16)               # (E, 3E)
    b_qkv = params["b_qkv"].reshape(1, 3 * E) * scale_vec            # (1, 3E) f32
    # NOTE: w_out is stored in x@W layout (E_in head-major, E_out); a PyTorch
    # out_proj.weight checkpoint ((E_out, E_in)) would need a transpose on import.
    w_out = params["w_out"].astype(bf16)                             # (E, E)

    x_flat = x.reshape(B * S, E)                                     # fold batch into rows

    args = [
        x_flat,
        params["ln1_g"], params["ln1_b"],
        w_qkv, b_qkv,
        w_out, params["b_out"],
        params["ln2_g"], params["ln2_b"],
        params["w1"].astype(bf16), params["b1"],
        params["w2"].astype(bf16), params["b2"],
    ]

    bb = 1 if batch_parallel else B                                  # batches per kernel call
    grid = (B // bb,)

    def full_spec(a):
        nd = a.ndim
        return pl.BlockSpec(a.shape, lambda b, nd=nd: (0,) * nd)

    x_spec = pl.BlockSpec((bb * S, E), lambda b: (b, 0))
    out_spec = pl.BlockSpec((bb * S, E), lambda b: (b, 0))
    attn_spec = pl.BlockSpec((bb, S, S), lambda b: (b, 0, 0))

    if need_weights:
        out_shape = (jax.ShapeDtypeStruct((B * S, E), jnp.float32),
                     jax.ShapeDtypeStruct((B, S, S), jnp.float32))
        out_specs = (out_spec, attn_spec)
    else:
        out_shape = jax.ShapeDtypeStruct((B * S, E), jnp.float32)
        out_specs = out_spec

    kernel = functools.partial(transformer_block_kernel,
                               num_heads=num_heads, seq_len=S, need_weights=need_weights)
    result = pl.pallas_call(
        kernel,
        out_shape=out_shape,
        grid=grid,
        in_specs=[x_spec] + [full_spec(a) for a in args[1:]],
        out_specs=out_specs,
        compiler_params=pltpu.CompilerParams(
            dimension_semantics=(("parallel",) if batch_parallel else ("arbitrary",))),
    )(*args)

    if need_weights:
        out_flat, attn_w = result
        return out_flat.reshape(B, S, E), attn_w
    return result.reshape(B, S, E)


def transformer_block_reference(x, params, num_heads):
    """Pure-JAX f32 reference matching the PyTorch forward."""
    B, S, E = x.shape
    H = num_heads
    hd = E // H

    def ln(z, g, b):
        mu = z.mean(-1, keepdims=True)
        var = ((z - mu) ** 2).mean(-1, keepdims=True)
        return (z - mu) / jnp.sqrt(var + _LN_EPS) * g + b

    xn = ln(x, params["ln1_g"], params["ln1_b"])
    qkv = xn @ params["w_qkv"] + params["b_qkv"]
    q, k, v = qkv[..., :E], qkv[..., E:2 * E], qkv[..., 2 * E:]

    def split(z):
        return z.reshape(B, S, H, hd).transpose(0, 2, 1, 3)

    q, k, v = split(q), split(k), split(v)
    scores = jnp.einsum('bhsd,bhtd->bhst', q, k) / math.sqrt(hd)
    p = jax.nn.softmax(scores, axis=-1)
    attn_w = p.mean(axis=1)
    ctx = jnp.einsum('bhst,bhtd->bhsd', p, v)
    ctx = ctx.transpose(0, 2, 1, 3).reshape(B, S, E)
    attn_out = ctx @ params["w_out"] + params["b_out"]
    x2 = attn_out + x
    x2n = ln(x2, params["ln2_g"], params["ln2_b"])
    h1 = x2n @ params["w1"] + params["b1"]
    h1 = _gelu_exact(h1)
    h2 = h1 @ params["w2"] + params["b2"]
    return h2 + x2, attn_w


def make_params(key, E, M):
    ks = jax.random.split(key, 6)
    std = 0.02
    return {
        # MSA block
        "ln1_g": jnp.ones((1, E), jnp.float32),
        "ln1_b": jnp.zeros((1, E), jnp.float32),
        # in_proj_weight is (3E, E) in PyTorch; stored transposed (E, 3E) for x @ W
        "w_qkv": std * jax.random.normal(ks[0], (E, 3 * E), jnp.float32),
        "b_qkv": jnp.zeros((1, 3 * E), jnp.float32),
        "w_out": std * jax.random.normal(ks[1], (E, E), jnp.float32),
        "b_out": jnp.zeros((1, E), jnp.float32),
        # MLP block
        "ln2_g": jnp.ones((1, E), jnp.float32),
        "ln2_b": jnp.zeros((1, E), jnp.float32),
        "w1": std * jax.random.normal(ks[2], (E, M), jnp.float32),
        "b1": std * jax.random.normal(ks[3], (1, M), jnp.float32),
        "w2": std * jax.random.normal(ks[4], (M, E), jnp.float32),
        "b2": std * jax.random.normal(ks[5], (1, E), jnp.float32),
    }


if __name__ == "__main__":
    # config: embedding_dims=32, num_heads=4, mlp_size=64, dropouts ignored (eval)
    B, S, E, H, M = 2, 8, 32, 4, 64

    key = jax.random.PRNGKey(0)
    kx, kp = jax.random.split(key)
    x = jax.random.normal(kx, (B, S, E), jnp.float32)
    params = make_params(kp, E, M)

    # Default path: whole batch per invocation (grid=(1,)) -- best for v5e/v6e.
    out, attn_w = transformer_block(x, params, H)
    jax.block_until_ready((out, attn_w))
    assert out.shape == (B, S, E)
    assert attn_w.shape == (B, S, S)

    # v7x-style path: grid=(B,), "parallel" over batch.
    out_p, attn_w_p = transformer_block(x, params, H, batch_parallel=True)
    jax.block_until_ready((out_p, attn_w_p))

    # Correctness vs. pure-JAX f32 reference (bf16 MXU operands -> loose tolerance).
    out_ref, attn_ref = transformer_block_reference(x, params, H)
    assert jnp.allclose(out, out_ref, atol=5e-2, rtol=5e-2), "output mismatch"
    assert jnp.allclose(attn_w, attn_ref, atol=2e-2, rtol=2e-2), "attn_w mismatch"
    assert jnp.allclose(out_p, out_ref, atol=5e-2, rtol=5e-2), "output mismatch (parallel)"
    assert jnp.allclose(attn_w_p, attn_ref, atol=2e-2, rtol=2e-2), "attn_w mismatch (parallel)"

    print("KERNEL_OK")
</pallas_src>

<mosaic_0001>
module attributes {stable_mosaic.version = 11 : i64} {
  func.func @transformer_block_kernel(%arg0: i32, %arg1: memref<16x32xf32, #tpu.memory_space<vmem>>, %arg2: memref<1x32xf32, #tpu.memory_space<vmem>>, %arg3: memref<1x32xf32, #tpu.memory_space<vmem>>, %arg4: memref<32x96xbf16, #tpu.memory_space<vmem>>, %arg5: memref<1x96xf32, #tpu.memory_space<vmem>>, %arg6: memref<32x32xbf16, #tpu.memory_space<vmem>>, %arg7: memref<1x32xf32, #tpu.memory_space<vmem>>, %arg8: memref<1x32xf32, #tpu.memory_space<vmem>>, %arg9: memref<1x32xf32, #tpu.memory_space<vmem>>, %arg10: memref<32x64xbf16, #tpu.memory_space<vmem>>, %arg11: memref<1x64xf32, #tpu.memory_space<vmem>>, %arg12: memref<64x32xbf16, #tpu.memory_space<vmem>>, %arg13: memref<1x32xf32, #tpu.memory_space<vmem>>, %arg14: memref<16x32xf32, #tpu.memory_space<vmem>>, %arg15: memref<2x8x8xf32, #tpu.memory_space<vmem>>) attributes {dimension_semantics = [#tpu.dimension_semantics<arbitrary>], iteration_bounds = array<i64: 1>, scalar_prefetch = 0 : i64, scratch_operands = 0 : i64, tpu.core_type = #tpu.core_type<tc>, window_params = [{transform_indices = @transform_0, window_bounds = array<i64: 16, 32>}, {pipeline_mode = #tpu.pipeline_mode<synchronous>, transform_indices = @transform_1, window_bounds = array<i64: 1, 32>}, {pipeline_mode = #tpu.pipeline_mode<synchronous>, transform_indices = @transform_2, window_bounds = array<i64: 1, 32>}, {pipeline_mode = #tpu.pipeline_mode<synchronous>, transform_indices = @transform_3, window_bounds = array<i64: 32, 96>}, {pipeline_mode = #tpu.pipeline_mode<synchronous>, transform_indices = @transform_4, window_bounds = array<i64: 1, 96>}, {pipeline_mode = #tpu.pipeline_mode<synchronous>, transform_indices = @transform_5, window_bounds = array<i64: 32, 32>}, {pipeline_mode = #tpu.pipeline_mode<synchronous>, transform_indices = @transform_6, window_bounds = array<i64: 1, 32>}, {pipeline_mode = #tpu.pipeline_mode<synchronous>, transform_indices = @transform_7, window_bounds = array<i64: 1, 32>}, {pipeline_mode = #tpu.pipeline_mode<synchronous>, transform_indices = @transform_8, window_bounds = array<i64: 1, 32>}, {pipeline_mode = #tpu.pipeline_mode<synchronous>, transform_indices = @transform_9, window_bounds = array<i64: 32, 64>}, {pipeline_mode = #tpu.pipeline_mode<synchronous>, transform_indices = @transform_10, window_bounds = array<i64: 1, 64>}, {pipeline_mode = #tpu.pipeline_mode<synchronous>, transform_indices = @transform_11, window_bounds = array<i64: 64, 32>}, {pipeline_mode = #tpu.pipeline_mode<synchronous>, transform_indices = @transform_12, window_bounds = array<i64: 1, 32>}, {transform_indices = @transform_13, window_bounds = array<i64: 16, 32>}, {transform_indices = @transform_14, window_bounds = array<i64: 2, 8, 8>}]} {
    %c0 = arith.constant 0 : index
    %c0_0 = arith.constant 0 : index
    %0 = vector.load %arg1[%c0, %c0_0] : memref<16x32xf32, #tpu.memory_space<vmem>>, vector<16x32xf32>
    %c0_1 = arith.constant 0 : index
    %c0_2 = arith.constant 0 : index
    %1 = vector.load %arg2[%c0_1, %c0_2] : memref<1x32xf32, #tpu.memory_space<vmem>>, vector<1x32xf32>
    %c0_3 = arith.constant 0 : index
    %c0_4 = arith.constant 0 : index
    %2 = vector.load %arg3[%c0_3, %c0_4] : memref<1x32xf32, #tpu.memory_space<vmem>>, vector<1x32xf32>
    %c0_5 = arith.constant 0 : index
    %c0_6 = arith.constant 0 : index
    %3 = vector.load %arg8[%c0_5, %c0_6] : memref<1x32xf32, #tpu.memory_space<vmem>>, vector<1x32xf32>
    %c0_7 = arith.constant 0 : index
    %c0_8 = arith.constant 0 : index
    %4 = vector.load %arg9[%c0_7, %c0_8] : memref<1x32xf32, #tpu.memory_space<vmem>>, vector<1x32xf32>
    %c0_9 = arith.constant 0 : index
    %c0_10 = arith.constant 0 : index
    %5 = vector.load %arg4[%c0_9, %c0_10] : memref<32x96xbf16, #tpu.memory_space<vmem>>, vector<32x96xbf16>
    %c0_11 = arith.constant 0 : index
    %c0_12 = arith.constant 0 : index
    %6 = vector.load %arg5[%c0_11, %c0_12] : memref<1x96xf32, #tpu.memory_space<vmem>>, vector<1x96xf32>
    %c0_13 = arith.constant 0 : index
    %c0_14 = arith.constant 0 : index
    %7 = vector.load %arg6[%c0_13, %c0_14] : memref<32x32xbf16, #tpu.memory_space<vmem>>, vector<32x32xbf16>
    %c0_15 = arith.constant 0 : index
    %c0_16 = arith.constant 0 : index
    %8 = vector.load %arg7[%c0_15, %c0_16] : memref<1x32xf32, #tpu.memory_space<vmem>>, vector<1x32xf32>
    %c0_17 = arith.constant 0 : index
    %c0_18 = arith.constant 0 : index
    %9 = vector.load %arg10[%c0_17, %c0_18] : memref<32x64xbf16, #tpu.memory_space<vmem>>, vector<32x64xbf16>
    %c0_19 = arith.constant 0 : index
    %c0_20 = arith.constant 0 : index
    %10 = vector.load %arg11[%c0_19, %c0_20] : memref<1x64xf32, #tpu.memory_space<vmem>>, vector<1x64xf32>
    %c0_21 = arith.constant 0 : index
    %c0_22 = arith.constant 0 : index
    %11 = vector.load %arg12[%c0_21, %c0_22] : memref<64x32xbf16, #tpu.memory_space<vmem>>, vector<64x32xbf16>
    %c0_23 = arith.constant 0 : index
    %c0_24 = arith.constant 0 : index
    %12 = vector.load %arg13[%c0_23, %c0_24] : memref<1x32xf32, #tpu.memory_space<vmem>>, vector<1x32xf32>
    %cst = arith.constant dense<0.000000e+00> : vector<16xf32>
    %13 = vector.multi_reduction <add>, %0, %cst [1] : vector<16x32xf32> to vector<16xf32>
    %14 = vector.shape_cast %13 : vector<16xf32> to vector<16x1xf32>
    %cst_25 = arith.constant 3.200000e+01 : f32
    %15 = vector.broadcast %cst_25 : f32 to vector<16x1xf32>
    %16 = arith.divf %14, %15 : vector<16x1xf32>
    %17 = vector.broadcast %16 : vector<16x1xf32> to vector<16x32xf32>
    %18 = arith.subf %0, %17 : vector<16x32xf32>
    %19 = arith.mulf %18, %18 : vector<16x32xf32>
    %cst_26 = arith.constant dense<0.000000e+00> : vector<16xf32>
    %20 = vector.multi_reduction <add>, %19, %cst_26 [1] : vector<16x32xf32> to vector<16xf32>
    %21 = vector.shape_cast %20 : vector<16xf32> to vector<16x1xf32>
    %cst_27 = arith.constant 3.200000e+01 : f32
    %22 = vector.broadcast %cst_27 : f32 to vector<16x1xf32>
    %23 = arith.divf %21, %22 : vector<16x1xf32>
    %24 = vector.broadcast %16 : vector<16x1xf32> to vector<16x32xf32>
    %25 = arith.subf %0, %24 : vector<16x32xf32>
    %cst_28 = arith.constant 9.99999974E-6 : f32
    %26 = vector.broadcast %cst_28 : f32 to vector<16x1xf32>
    %27 = arith.addf %23, %26 : vector<16x1xf32>
    %28 = math.rsqrt %27 : vector<16x1xf32>
    %29 = vector.broadcast %28 : vector<16x1xf32> to vector<16x32xf32>
    %30 = arith.mulf %25, %29 : vector<16x32xf32>
    %31 = vector.broadcast %1 : vector<1x32xf32> to vector<16x32xf32>
    %32 = arith.mulf %30, %31 : vector<16x32xf32>
    %33 = vector.broadcast %2 : vector<1x32xf32> to vector<16x32xf32>
    %34 = arith.addf %32, %33 : vector<16x32xf32>
    %35 = arith.truncf %34 : vector<16x32xf32> to vector<16x32xbf16>
    %cst_29 = arith.constant dense<0.000000e+00> : vector<16x96xf32>
    %36 = tpu.matmul %35, %5, %cst_29 {dimension_numbers = #tpu.dot_dimension_numbers<[1], [0], [0], [1], [0, 0, 1, 1], [], []>} : vector<16x32xbf16>, vector<32x96xbf16>, vector<16x96xf32> -> vector<16x96xf32>
    %37 = vector.broadcast %6 : vector<1x96xf32> to vector<16x96xf32>
    %38 = arith.addf %36, %37 : vector<16x96xf32>
    %39 = vector.extract_strided_slice %38 {offsets = [0, 0], sizes = [8, 8], strides = [1, 1]} : vector<16x96xf32> to vector<8x8xf32>
    %40 = vector.extract_strided_slice %38 {offsets = [0, 32], sizes = [8, 8], strides = [1, 1]} : vector<16x96xf32> to vector<8x8xf32>
    %41 = vector.extract_strided_slice %38 {offsets = [0, 64], sizes = [8, 8], strides = [1, 1]} : vector<16x96xf32> to vector<8x8xf32>
    %42 = vector.extract_strided_slice %38 {offsets = [0, 8], sizes = [8, 8], strides = [1, 1]} : vector<16x96xf32> to vector<8x8xf32>
    %43 = vector.extract_strided_slice %38 {offsets = [0, 40], sizes = [8, 8], strides = [1, 1]} : vector<16x96xf32> to vector<8x8xf32>
    %44 = vector.extract_strided_slice %38 {offsets = [0, 72], sizes = [8, 8], strides = [1, 1]} : vector<16x96xf32> to vector<8x8xf32>
    %45 = vector.extract_strided_slice %38 {offsets = [0, 16], sizes = [8, 8], strides = [1, 1]} : vector<16x96xf32> to vector<8x8xf32>
    %46 = vector.extract_strided_slice %38 {offsets = [0, 48], sizes = [8, 8], strides = [1, 1]} : vector<16x96xf32> to vector<8x8xf32>
    %47 = vector.extract_strided_slice %38 {offsets = [0, 80], sizes = [8, 8], strides = [1, 1]} : vector<16x96xf32> to vector<8x8xf32>
    %48 = vector.extract_strided_slice %38 {offsets = [0, 24], sizes = [8, 8], strides = [1, 1]} : vector<16x96xf32> to vector<8x8xf32>
    %49 = vector.extract_strided_slice %38 {offsets = [0, 56], sizes = [8, 8], strides = [1, 1]} : vector<16x96xf32> to vector<8x8xf32>
    %50 = vector.extract_strided_slice %38 {offsets = [0, 88], sizes = [8, 8], strides = [1, 1]} : vector<16x96xf32> to vector<8x8xf32>
    %51 = vector.extract_strided_slice %38 {offsets = [8, 0], sizes = [8, 8], strides = [1, 1]} : vector<16x96xf32> to vector<8x8xf32>
    %52 = vector.extract_strided_slice %38 {offsets = [8, 32], sizes = [8, 8], strides = [1, 1]} : vector<16x96xf32> to vector<8x8xf32>
    %53 = vector.extract_strided_slice %38 {offsets = [8, 64], sizes = [8, 8], strides = [1, 1]} : vector<16x96xf32> to vector<8x8xf32>
    %54 = vector.extract_strided_slice %38 {offsets = [8, 8], sizes = [8, 8], strides = [1, 1]} : vector<16x96xf32> to vector<8x8xf32>
    %55 = vector.extract_strided_slice %38 {offsets = [8, 40], sizes = [8, 8], strides = [1, 1]} : vector<16x96xf32> to vector<8x8xf32>
    %56 = vector.extract_strided_slice %38 {offsets = [8, 72], sizes = [8, 8], strides = [1, 1]} : vector<16x96xf32> to vector<8x8xf32>
    %57 = vector.extract_strided_slice %38 {offsets = [8, 16], sizes = [8, 8], strides = [1, 1]} : vector<16x96xf32> to vector<8x8xf32>
    %58 = vector.extract_strided_slice %38 {offsets = [8, 48], sizes = [8, 8], strides = [1, 1]} : vector<16x96xf32> to vector<8x8xf32>
    %59 = vector.extract_strided_slice %38 {offsets = [8, 80], sizes = [8, 8], strides = [1, 1]} : vector<16x96xf32> to vector<8x8xf32>
    %60 = vector.extract_strided_slice %38 {offsets = [8, 24], sizes = [8, 8], strides = [1, 1]} : vector<16x96xf32> to vector<8x8xf32>
    %61 = vector.extract_strided_slice %38 {offsets = [8, 56], sizes = [8, 8], strides = [1, 1]} : vector<16x96xf32> to vector<8x8xf32>
    %62 = vector.extract_strided_slice %38 {offsets = [8, 88], sizes = [8, 8], strides = [1, 1]} : vector<16x96xf32> to vector<8x8xf32>
    %63 = vector.shape_cast %39 : vector<8x8xf32> to vector<1x8x8xf32>
    %64 = vector.shape_cast %42 : vector<8x8xf32> to vector<1x8x8xf32>
    %65 = vector.shape_cast %45 : vector<8x8xf32> to vector<1x8x8xf32>
    %66 = vector.shape_cast %48 : vector<8x8xf32> to vector<1x8x8xf32>
    %67 = vector.shape_cast %51 : vector<8x8xf32> to vector<1x8x8xf32>
    %68 = vector.shape_cast %54 : vector<8x8xf32> to vector<1x8x8xf32>
    %69 = vector.shape_cast %57 : vector<8x8xf32> to vector<1x8x8xf32>
    %70 = vector.shape_cast %60 : vector<8x8xf32> to vector<1x8x8xf32>
    %71 = tpu.concatenate %63, %64, %65, %66, %67, %68, %69, %70 in 0 : vector<1x8x8xf32>, vector<1x8x8xf32>, vector<1x8x8xf32>, vector<1x8x8xf32>, vector<1x8x8xf32>, vector<1x8x8xf32>, vector<1x8x8xf32>, vector<1x8x8xf32> -> vector<8x8x8xf32>
    %72 = arith.truncf %71 : vector<8x8x8xf32> to vector<8x8x8xbf16>
    %73 = vector.shape_cast %40 : vector<8x8xf32> to vector<1x8x8xf32>
    %74 = vector.shape_cast %43 : vector<8x8xf32> to vector<1x8x8xf32>
    %75 = vector.shape_cast %46 : vector<8x8xf32> to vector<1x8x8xf32>
    %76 = vector.shape_cast %49 : vector<8x8xf32> to vector<1x8x8xf32>
    %77 = vector.shape_cast %52 : vector<8x8xf32> to vector<1x8x8xf32>
    %78 = vector.shape_cast %55 : vector<8x8xf32> to vector<1x8x8xf32>
    %79 = vector.shape_cast %58 : vector<8x8xf32> to vector<1x8x8xf32>
    %80 = vector.shape_cast %61 : vector<8x8xf32> to vector<1x8x8xf32>
    %81 = tpu.concatenate %73, %74, %75, %76, %77, %78, %79, %80 in 0 : vector<1x8x8xf32>, vector<1x8x8xf32>, vector<1x8x8xf32>, vector<1x8x8xf32>, vector<1x8x8xf32>, vector<1x8x8xf32>, vector<1x8x8xf32>, vector<1x8x8xf32> -> vector<8x8x8xf32>
    %82 = arith.truncf %81 : vector<8x8x8xf32> to vector<8x8x8xbf16>
    %83 = vector.shape_cast %41 : vector<8x8xf32> to vector<1x8x8xf32>
    %84 = vector.shape_cast %44 : vector<8x8xf32> to vector<1x8x8xf32>
    %85 = vector.shape_cast %47 : vector<8x8xf32> to vector<1x8x8xf32>
    %86 = vector.shape_cast %50 : vector<8x8xf32> to vector<1x8x8xf32>
    %87 = vector.shape_cast %53 : vector<8x8xf32> to vector<1x8x8xf32>
    %88 = vector.shape_cast %56 : vector<8x8xf32> to vector<1x8x8xf32>
    %89 = vector.shape_cast %59 : vector<8x8xf32> to vector<1x8x8xf32>
    %90 = vector.shape_cast %62 : vector<8x8xf32> to vector<1x8x8xf32>
    %91 = tpu.concatenate %83, %84, %85, %86, %87, %88, %89, %90 in 0 : vector<1x8x8xf32>, vector<1x8x8xf32>, vector<1x8x8xf32>, vector<1x8x8xf32>, vector<1x8x8xf32>, vector<1x8x8xf32>, vector<1x8x8xf32>, vector<1x8x8xf32> -> vector<8x8x8xf32>
    %92 = arith.truncf %91 : vector<8x8x8xf32> to vector<8x8x8xbf16>
    "tpu.trace_start"() <{level = 10 : i32, message = "nsd,ntd->nst"}> : () -> ()
    %cst_30 = arith.constant dense<0.000000e+00> : vector<8x8x8xf32>
    %93 = tpu.matmul %72, %82, %cst_30 {dimension_numbers = #tpu.dot_dimension_numbers<[2], [2], [1], [1], [0, 0, 0, 1, 1, 1], [0], [0]>} : vector<8x8x8xbf16>, vector<8x8x8xbf16>, vector<8x8x8xf32> -> vector<8x8x8xf32>
    "tpu.trace_stop"() : () -> ()
    %cst_31 = arith.constant dense<0xFF800000> : vector<8x8xf32>
    %94 = vector.multi_reduction <maximumf>, %93, %cst_31 [2] : vector<8x8x8xf32> to vector<8x8xf32>
    %95 = vector.shape_cast %94 : vector<8x8xf32> to vector<8x8x1xf32>
    %96 = vector.broadcast %95 : vector<8x8x1xf32> to vector<8x8x8xf32>
    %97 = arith.subf %93, %96 : vector<8x8x8xf32>
    %98 = math.exp %97 : vector<8x8x8xf32>
    %cst_32 = arith.constant dense<0.000000e+00> : vector<8x8xf32>
    %99 = vector.multi_reduction <add>, %98, %cst_32 [2] : vector<8x8x8xf32> to vector<8x8xf32>
    %100 = vector.shape_cast %99 : vector<8x8xf32> to vector<8x8x1xf32>
    %101 = vector.broadcast %100 : vector<8x8x1xf32> to vector<8x8x8xf32>
    %102 = arith.divf %98, %101 : vector<8x8x8xf32>
    %103 = vector.extract_strided_slice %102 {offsets = [0, 0, 0], sizes = [1, 8, 8], strides = [1, 1, 1]} : vector<8x8x8xf32> to vector<1x8x8xf32>
    %104 = vector.shape_cast %103 : vector<1x8x8xf32> to vector<8x8xf32>
    %105 = vector.extract_strided_slice %102 {offsets = [1, 0, 0], sizes = [1, 8, 8], strides = [1, 1, 1]} : vector<8x8x8xf32> to vector<1x8x8xf32>
    %106 = vector.shape_cast %105 : vector<1x8x8xf32> to vector<8x8xf32>
    %107 = arith.addf %104, %106 : vector<8x8xf32>
    %108 = vector.extract_strided_slice %102 {offsets = [2, 0, 0], sizes = [1, 8, 8], strides = [1, 1, 1]} : vector<8x8x8xf32> to vector<1x8x8xf32>
    %109 = vector.shape_cast %108 : vector<1x8x8xf32> to vector<8x8xf32>
    %110 = arith.addf %107, %109 : vector<8x8xf32>
    %111 = vector.extract_strided_slice %102 {offsets = [3, 0, 0], sizes = [1, 8, 8], strides = [1, 1, 1]} : vector<8x8x8xf32> to vector<1x8x8xf32>
    %112 = vector.shape_cast %111 : vector<1x8x8xf32> to vector<8x8xf32>
    %113 = arith.addf %110, %112 : vector<8x8xf32>
    %cst_33 = arith.constant 2.500000e-01 : f32
    %114 = vector.broadcast %cst_33 : f32 to vector<8x8xf32>
    %115 = arith.mulf %113, %114 : vector<8x8xf32>
    %c0_34 = arith.constant 0 : index
    %c0_35 = arith.constant 0 : index
    %c0_36 = arith.constant 0 : index
    %116 = vector.load %arg15[%c0_34, %c0_35, %c0_36] : memref<2x8x8xf32, #tpu.memory_space<vmem>>, vector<1x8x8xf32>
    %117 = vector.shape_cast %116 : vector<1x8x8xf32> to vector<8x8xf32>
    %118 = vector.shape_cast %115 : vector<8x8xf32> to vector<1x8x8xf32>
    tpu.vector_store %arg15[%c0_34, %c0_35, %c0_36], %118 {strides = array<i32>} : memref<2x8x8xf32, #tpu.memory_space<vmem>>, vector<1x8x8xf32>,
    %119 = vector.extract_strided_slice %102 {offsets = [4, 0, 0], sizes = [1, 8, 8], strides = [1, 1, 1]} : vector<8x8x8xf32> to vector<1x8x8xf32>
    %120 = vector.shape_cast %119 : vector<1x8x8xf32> to vector<8x8xf32>
    %121 = vector.extract_strided_slice %102 {offsets = [5, 0, 0], sizes = [1, 8, 8], strides = [1, 1, 1]} : vector<8x8x8xf32> to vector<1x8x8xf32>
    %122 = vector.shape_cast %121 : vector<1x8x8xf32> to vector<8x8xf32>
    %123 = arith.addf %120, %122 : vector<8x8xf32>
    %124 = vector.extract_strided_slice %102 {offsets = [6, 0, 0], sizes = [1, 8, 8], strides = [1, 1, 1]} : vector<8x8x8xf32> to vector<1x8x8xf32>
    %125 = vector.shape_cast %124 : vector<1x8x8xf32> to vector<8x8xf32>
    %126 = arith.addf %123, %125 : vector<8x8xf32>
    %127 = vector.extract_strided_slice %102 {offsets = [7, 0, 0], sizes = [1, 8, 8], strides = [1, 1, 1]} : vector<8x8x8xf32> to vector<1x8x8xf32>
    %128 = vector.shape_cast %127 : vector<1x8x8xf32> to vector<8x8xf32>
    %129 = arith.addf %126, %128 : vector<8x8xf32>
    %cst_37 = arith.constant 2.500000e-01 : f32
    %130 = vector.broadcast %cst_37 : f32 to vector<8x8xf32>
    %131 = arith.mulf %129, %130 : vector<8x8xf32>
    %c1 = arith.constant 1 : index
    %c0_38 = arith.constant 0 : index
    %c0_39 = arith.constant 0 : index
    %132 = vector.load %arg15[%c1, %c0_38, %c0_39] : memref<2x8x8xf32, #tpu.memory_space<vmem>>, vector<1x8x8xf32>
    %133 = vector.shape_cast %132 : vector<1x8x8xf32> to vector<8x8xf32>
    %134 = vector.shape_cast %131 : vector<8x8xf32> to vector<1x8x8xf32>
    tpu.vector_store %arg15[%c1, %c0_38, %c0_39], %134 {strides = array<i32>} : memref<2x8x8xf32, #tpu.memory_space<vmem>>, vector<1x8x8xf32>,
    %135 = arith.truncf %102 : vector<8x8x8xf32> to vector<8x8x8xbf16>
    "tpu.trace_start"() <{level = 10 : i32, message = "nst,ntd->nsd"}> : () -> ()
    %cst_40 = arith.constant dense<0.000000e+00> : vector<8x8x8xf32>
    %136 = tpu.matmul %135, %92, %cst_40 {dimension_numbers = #tpu.dot_dimension_numbers<[2], [1], [1], [2], [0, 0, 0, 1, 1, 2], [0], [0]>} : vector<8x8x8xbf16>, vector<8x8x8xbf16>, vector<8x8x8xf32> -> vector<8x8x8xf32>
    "tpu.trace_stop"() : () -> ()
    %137 = vector.extract_strided_slice %136 {offsets = [0, 0, 0], sizes = [1, 8, 8], strides = [1, 1, 1]} : vector<8x8x8xf32> to vector<1x8x8xf32>
    %138 = vector.shape_cast %137 : vector<1x8x8xf32> to vector<8x8xf32>
    %139 = vector.extract_strided_slice %136 {offsets = [1, 0, 0], sizes = [1, 8, 8], strides = [1, 1, 1]} : vector<8x8x8xf32> to vector<1x8x8xf32>
    %140 = vector.shape_cast %139 : vector<1x8x8xf32> to vector<8x8xf32>
    %141 = vector.extract_strided_slice %136 {offsets = [2, 0, 0], sizes = [1, 8, 8], strides = [1, 1, 1]} : vector<8x8x8xf32> to vector<1x8x8xf32>
    %142 = vector.shape_cast %141 : vector<1x8x8xf32> to vector<8x8xf32>
    %143 = vector.extract_strided_slice %136 {offsets = [3, 0, 0], sizes = [1, 8, 8], strides = [1, 1, 1]} : vector<8x8x8xf32> to vector<1x8x8xf32>
    %144 = vector.shape_cast %143 : vector<1x8x8xf32> to vector<8x8xf32>
    %145 = tpu.concatenate %138, %140, %142, %144 in 1 : vector<8x8xf32>, vector<8x8xf32>, vector<8x8xf32>, vector<8x8xf32> -> vector<8x32xf32>
    %146 = vector.extract_strided_slice %136 {offsets = [4, 0, 0], sizes = [1, 8, 8], strides = [1, 1, 1]} : vector<8x8x8xf32> to vector<1x8x8xf32>
    %147 = vector.shape_cast %146 : vector<1x8x8xf32> to vector<8x8xf32>
    %148 = vector.extract_strided_slice %136 {offsets = [5, 0, 0], sizes = [1, 8, 8], strides = [1, 1, 1]} : vector<8x8x8xf32> to vector<1x8x8xf32>
    %149 = vector.shape_cast %148 : vector<1x8x8xf32> to vector<8x8xf32>
    %150 = vector.extract_strided_slice %136 {offsets = [6, 0, 0], sizes = [1, 8, 8], strides = [1, 1, 1]} : vector<8x8x8xf32> to vector<1x8x8xf32>
    %151 = vector.shape_cast %150 : vector<1x8x8xf32> to vector<8x8xf32>
    %152 = vector.extract_strided_slice %136 {offsets = [7, 0, 0], sizes = [1, 8, 8], strides = [1, 1, 1]} : vector<8x8x8xf32> to vector<1x8x8xf32>
    %153 = vector.shape_cast %152 : vector<1x8x8xf32> to vector<8x8xf32>
    %154 = tpu.concatenate %147, %149, %151, %153 in 1 : vector<8x8xf32>, vector<8x8xf32>, vector<8x8xf32>, vector<8x8xf32> -> vector<8x32xf32>
    %155 = tpu.concatenate %145, %154 in 0 : vector<8x32xf32>, vector<8x32xf32> -> vector<16x32xf32>
    %156 = arith.truncf %155 : vector<16x32xf32> to vector<16x32xbf16>
    %cst_41 = arith.constant dense<0.000000e+00> : vector<16x32xf32>
    %157 = tpu.matmul %156, %7, %cst_41 {dimension_numbers = #tpu.dot_dimension_numbers<[1], [0], [0], [1], [0, 0, 1, 1], [], []>} : vector<16x32xbf16>, vector<32x32xbf16>, vector<16x32xf32> -> vector<16x32xf32>
    %158 = vector.broadcast %8 : vector<1x32xf32> to vector<16x32xf32>
    %159 = arith.addf %157, %158 : vector<16x32xf32>
    %160 = arith.addf %159, %0 : vector<16x32xf32>
    %cst_42 = arith.constant dense<0.000000e+00> : vector<16xf32>
    %161 = vector.multi_reduction <add>, %160, %cst_42 [1] : vector<16x32xf32> to vector<16xf32>
    %162 = vector.shape_cast %161 : vector<16xf32> to vector<16x1xf32>
    %cst_43 = arith.constant 3.200000e+01 : f32
    %163 = vector.broadcast %cst_43 : f32 to vector<16x1xf32>
    %164 = arith.divf %162, %163 : vector<16x1xf32>
    %165 = vector.broadcast %164 : vector<16x1xf32> to vector<16x32xf32>
    %166 = arith.subf %160, %165 : vector<16x32xf32>
    %167 = arith.mulf %166, %166 : vector<16x32xf32>
    %cst_44 = arith.constant dense<0.000000e+00> : vector<16xf32>
    %168 = vector.multi_reduction <add>, %167, %cst_44 [1] : vector<16x32xf32> to vector<16xf32>
    %169 = vector.shape_cast %168 : vector<16xf32> to vector<16x1xf32>
    %cst_45 = arith.constant 3.200000e+01 : f32
    %170 = vector.broadcast %cst_45 : f32 to vector<16x1xf32>
    %171 = arith.divf %169, %170 : vector<16x1xf32>
    %172 = vector.broadcast %164 : vector<16x1xf32> to vector<16x32xf32>
    %173 = arith.subf %160, %172 : vector<16x32xf32>
    %cst_46 = arith.constant 9.99999974E-6 : f32
    %174 = vector.broadcast %cst_46 : f32 to vector<16x1xf32>
    %175 = arith.addf %171, %174 : vector<16x1xf32>
    %176 = math.rsqrt %175 : vector<16x1xf32>
    %177 = vector.broadcast %176 : vector<16x1xf32> to vector<16x32xf32>
    %178 = arith.mulf %173, %177 : vector<16x32xf32>
    %179 = vector.broadcast %3 : vector<1x32xf32> to vector<16x32xf32>
    %180 = arith.mulf %178, %179 : vector<16x32xf32>
    %181 = vector.broadcast %4 : vector<1x32xf32> to vector<16x32xf32>
    %182 = arith.addf %180, %181 : vector<16x32xf32>
    %183 = arith.truncf %182 : vector<16x32xf32> to vector<16x32xbf16>
    %cst_47 = arith.constant dense<0.000000e+00> : vector<16x64xf32>
    %184 = tpu.matmul %183, %9, %cst_47 {dimension_numbers = #tpu.dot_dimension_numbers<[1], [0], [0], [1], [0, 0, 1, 1], [], []>} : vector<16x32xbf16>, vector<32x64xbf16>, vector<16x64xf32> -> vector<16x64xf32>
    %185 = vector.broadcast %10 : vector<1x64xf32> to vector<16x64xf32>
    %186 = arith.addf %184, %185 : vector<16x64xf32>
    %cst_48 = arith.constant 5.000000e-01 : f32
    %187 = vector.broadcast %cst_48 : f32 to vector<16x64xf32>
    %188 = arith.mulf %187, %186 : vector<16x64xf32>
    %cst_49 = arith.constant 1.41421354 : f32
    %189 = vector.broadcast %cst_49 : f32 to vector<16x64xf32>
    %190 = arith.divf %186, %189 : vector<16x64xf32>
    %191 = math.erf %190 : vector<16x64xf32>
    %cst_50 = arith.constant 1.000000e+00 : f32
    %192 = vector.broadcast %cst_50 : f32 to vector<16x64xf32>
    %193 = arith.addf %192, %191 : vector<16x64xf32>
    %194 = arith.mulf %188, %193 : vector<16x64xf32>
    %195 = arith.truncf %194 : vector<16x64xf32> to vector<16x64xbf16>
    %cst_51 = arith.constant dense<0.000000e+00> : vector<16x32xf32>
    %196 = tpu.matmul %195, %11, %cst_51 {dimension_numbers = #tpu.dot_dimension_numbers<[1], [0], [0], [1], [0, 0, 1, 1], [], []>} : vector<16x64xbf16>, vector<64x32xbf16>, vector<16x32xf32> -> vector<16x32xf32>
    %197 = vector.broadcast %12 : vector<1x32xf32> to vector<16x32xf32>
    %198 = arith.addf %196, %197 : vector<16x32xf32>
    %199 = arith.addf %198, %160 : vector<16x32xf32>
    %c0_52 = arith.constant 0 : index
    %c0_53 = arith.constant 0 : index
    %200 = vector.load %arg14[%c0_52, %c0_53] : memref<16x32xf32, #tpu.memory_space<vmem>>, vector<16x32xf32>
    tpu.vector_store %arg14[%c0_52, %c0_53], %199 {strides = array<i32>} : memref<16x32xf32, #tpu.memory_space<vmem>>, vector<16x32xf32>,
    return
  }
  func.func @transform_0(%arg0: i32) -> (i32, i32) {
    %c0_i32 = arith.constant 0 : i32
    %c0_i32_0 = arith.constant 0 : i32
    return %arg0, %c0_i32 : i32, i32
  }
  func.func @transform_1(%arg0: i32) -> (i32, i32) {
    %c0_i32 = arith.constant 0 : i32
    %c0_i32_0 = arith.constant 0 : i32
    %c0_i32_1 = arith.constant 0 : i32
    return %c0_i32, %c0_i32_0 : i32, i32
  }
  func.func @transform_2(%arg0: i32) -> (i32, i32) {
    %c0_i32 = arith.constant 0 : i32
    %c0_i32_0 = arith.constant 0 : i32
    %c0_i32_1 = arith.constant 0 : i32
    return %c0_i32, %c0_i32_0 : i32, i32
  }
  func.func @transform_3(%arg0: i32) -> (i32, i32) {
    %c0_i32 = arith.constant 0 : i32
    %c0_i32_0 = arith.constant 0 : i32
    %c0_i32_1 = arith.constant 0 : i32
    return %c0_i32, %c0_i32_0 : i32, i32
  }
  func.func @transform_4(%arg0: i32) -> (i32, i32) {
    %c0_i32 = arith.constant 0 : i32
    %c0_i32_0 = arith.constant 0 : i32
    %c0_i32_1 = arith.constant 0 : i32
    return %c0_i32, %c0_i32_0 : i32, i32
  }
  func.func @transform_5(%arg0: i32) -> (i32, i32) {
    %c0_i32 = arith.constant 0 : i32
    %c0_i32_0 = arith.constant 0 : i32
    %c0_i32_1 = arith.constant 0 : i32
    return %c0_i32, %c0_i32_0 : i32, i32
  }
  func.func @transform_6(%arg0: i32) -> (i32, i32) {
    %c0_i32 = arith.constant 0 : i32
    %c0_i32_0 = arith.constant 0 : i32
    %c0_i32_1 = arith.constant 0 : i32
    return %c0_i32, %c0_i32_0 : i32, i32
  }
  func.func @transform_7(%arg0: i32) -> (i32, i32) {
    %c0_i32 = arith.constant 0 : i32
    %c0_i32_0 = arith.constant 0 : i32
    %c0_i32_1 = arith.constant 0 : i32
    return %c0_i32, %c0_i32_0 : i32, i32
  }
  func.func @transform_8(%arg0: i32) -> (i32, i32) {
    %c0_i32 = arith.constant 0 : i32
    %c0_i32_0 = arith.constant 0 : i32
    %c0_i32_1 = arith.constant 0 : i32
    return %c0_i32, %c0_i32_0 : i32, i32
  }
  func.func @transform_9(%arg0: i32) -> (i32, i32) {
    %c0_i32 = arith.constant 0 : i32
    %c0_i32_0 = arith.constant 0 : i32
    %c0_i32_1 = arith.constant 0 : i32
    return %c0_i32, %c0_i32_0 : i32, i32
  }
  func.func @transform_10(%arg0: i32) -> (i32, i32) {
    %c0_i32 = arith.constant 0 : i32
    %c0_i32_0 = arith.constant 0 : i32
    %c0_i32_1 = arith.constant 0 : i32
    return %c0_i32, %c0_i32_0 : i32, i32
  }
  func.func @transform_11(%arg0: i32) -> (i32, i32) {
    %c0_i32 = arith.constant 0 : i32
    %c0_i32_0 = arith.constant 0 : i32
    %c0_i32_1 = arith.constant 0 : i32
    return %c0_i32, %c0_i32_0 : i32, i32
  }
  func.func @transform_12(%arg0: i32) -> (i32, i32) {
    %c0_i32 = arith.constant 0 : i32
    %c0_i32_0 = arith.constant 0 : i32
    %c0_i32_1 = arith.constant 0 : i32
    return %c0_i32, %c0_i32_0 : i32, i32
  }
  func.func @transform_13(%arg0: i32) -> (i32, i32) {
    %c0_i32 = arith.constant 0 : i32
    %c0_i32_0 = arith.constant 0 : i32
    return %arg0, %c0_i32 : i32, i32
  }
  func.func @transform_14(%arg0: i32) -> (i32, i32, i32) {
    %c0_i32 = arith.constant 0 : i32
    %c0_i32_0 = arith.constant 0 : i32
    %c0_i32_1 = arith.constant 0 : i32
    return %arg0, %c0_i32, %c0_i32_0 : i32, i32, i32
  }
}

</mosaic_0001>

<bundles_post_ra>
// kernel: tpu_custom_call.1
= control target key start
LH: loop header
LB: loop body
LE: loop exit
PB: predicated region body
PF: predicated region fallthrough
CT: control target
= control target key end

     0   :  { %20 = vsyncpa [#allocation3], 0  ;;  %s1826_s0 = inlined_call_operand.vmem [shape: f32[16,32], index: 0, kind: input, shape index: {}]   ;;  %s1827_s1 = inlined_call_operand.hbm [shape: f32[1,32], index: 1, kind: input, shape index: {}]   ;;  %s1828_s2 = inlined_call_operand.vmem [shape: f32[1,32], index: 2, kind: input, shape index: {}]   ;;  %s1829_s3 = inlined_call_operand.vmem [shape: bf16[32,96], index: 3, kind: input, shape index: {}]   ;;  %s1830_s4 = inlined_call_operand.vmem [shape: f32[1,96], index: 4, kind: input, shape index: {}]   ;;  %s1831_s5 = inlined_call_operand.vmem [shape: bf16[32,32], index: 5, kind: input, shape index: {}]   ;;  %s1832_s6 = inlined_call_operand.vmem [shape: f32[1,32], index: 6, kind: input, shape index: {}]   ;;  %s1833_s7 = inlined_call_operand.vmem [shape: f32[1,32], index: 7, kind: input, shape index: {}]   ;;  %s1834_s8 = inlined_call_operand.vmem [shape: f32[1,32], index: 8, kind: input, shape index: {}]   ;;  %s1835_s9 = inlined_call_operand.hbm [shape: bf16[32,64], index: 9, kind: input, shape index: {}]   ;;  %s1836_s10 = inlined_call_operand.vmem [shape: f32[1,64], index: 10, kind: input, shape index: {}]   ;;  %s1837_s11 = inlined_call_operand.vmem [shape: bf16[64,32], index: 11, kind: input, shape index: {}]   ;;  %s1838_s12 = inlined_call_operand.vmem [shape: f32[1,32], index: 12, kind: input, shape index: {}]   ;;  %s1839_s13 = inlined_call_operand.hbm [shape: f32[16,32], index: 13, kind: output, shape index: {0}]   ;;  %s1840_s14 = inlined_call_operand.hbm [shape: f32[2,8,8], index: 14, kind: output, shape index: {1}]  }
   0x1   :  { %21 = vsyncpa [#allocation6], 0 }
   0x2   :  { %22 = vsyncpa [#allocation4], 0 }
   0x3   :  { %23 = vsyncpa [#allocation9], 0  ;;  %s31_s15 = sshll.u32 %s1827_s1, 4  ;;  %s1405_s16 = smov [#allocation2]   ;;  %s32_s15 = int_to_ptr.hbm [resolvable:$true] %s31_s15 }
   0x4   :  { %s33_s17 = sshll.u32 %s1405_s16, 4  ;;  %s55_s20 = sshll.u32 %s1835_s9, 4  ;;  %s34_s17 = int_to_ptr.vmem [resolvable:$true] %s33_s17  ;;  %s56_s20 = int_to_ptr.hbm [resolvable:$true] %s55_s20 }
   0x5   :  { %36 = dma.hbm_to_vmem [thread:$0]  %s32_s15, 16, %s34_s17, [#allocation3]  }
   0x6   :  { %s1406_s21 = smov [#allocation5]   ;;  %s1407_s23 = smov 64  }
   0x7   :  { %s57_s22 = sshll.u32 %s1406_s21, 4  ;;  %s1408_s24 = smov 4   ;;  %s58_s22 = int_to_ptr.vmem [resolvable:$true] %s57_s22 }
   0x8   :  { %63 = dma.hbm_to_vmem [thread:$0]  %s56_s20, 256, %s58_s22, [#allocation6], %s1407_s23, %s1407_s23, %s1408_s24  }
   0x9   :  { %1397 = dma.done.wait [#allocation3], 16  }
   0xa   :  { %1398 = vsyncadd [#allocation3], 4294967280 }
   0xb   :  { %1399 = dma.done.wait [#allocation6], 256  }
   0xc   :  { %1400 = vsyncadd [#allocation6], 4294967040  ;;  %vm109_vm0 = vcmask 261120   ;;  %v1507_v0 = vld [vmem:[%s1826_s0] sm:$0xff]  ;;  %v1514_v2 = vld [vmem:[%s1826_s0 + $0x8] sm:$0xff]  ;;  %v1409_v4 = vmov 32.0  }
   0xd   :  { %v110_v1 = vsel %vm109_vm0, %v1507_v0, 0.0  ;;  %v113_v3 = vsel %vm109_vm0, %v1514_v2, 0.0  ;;  %1253 = vrcp.f32 %v1409_v4  ;;  %v1205_v21 = vld [vmem:[%s1829_s3 + $0x8] sm:$0xff]  ;;  %v1204_v23 = vld [vmem:[%s1829_s3] sm:$0xff]  ;;  %s1410_s17 = smov 104   ;;  %s1411_s18 = smov 120  }
   0xe   :  { %111 = vadd.xlane.f32.xlu0 %v110_v1  ;;  %196 = vmatpush.bf16.msra.mxu0 %v1205_v21  ;;  %v1245_v42 = vld [vmem:[#allocation2] ss:$0 sm:$0xff]  ;;  %s1413_s19 = smov 96   ;;  %vm237_vm8 = vcmask 64512   ;;  %vm641_vm9 = vcmask 1043456   ;;  %s1415_s20 = smov 16  }
   0xf   :  { %v1246_v47 = vld [vmem:[%s1828_s2] ss:$0 sm:$0xff]  ;;  %s1412_s2 = smov 112   ;;  %s1416_s21 = smov 24  }
  0x10   :  { %v1247_v52 = vld [vmem:[%s1830_s4] ss:$0 sm:$0xff]  ;;  %s1414_s4 = smov 8  }
  0x12   :  { %197 = vmatpush.bf16.msra.mxu0 %v1204_v23 }
  0x13   :  { %v1254_v5 = vpop.eup %1253 }
  0x14   :  { %v117_v6 = vmul.f32 32.0, %v1254_v5  ;;  %vm121_vm1 = vweird.f32 %v1254_v5 }
  0x16   :  { %114 = vadd.xlane.f32.xlu0 %v113_v3  ;;  %v118_v7 = vsub.f32 1.0, %v117_v6 }
  0x18   :  { %v119_v8 = vmul.f32 %v1254_v5, %v118_v7 }
  0x1a   :  { %v120_v9 = vadd.f32 %v1254_v5, %v119_v8 }
  0x1c   :  { %v1518_v10 = vsel %vm121_vm1, %v1254_v5, %v120_v9 }
  0x81   :  { %v112_v11 = vpop.xlane.xlu0 %111 }
  0x82   :  { %v123_v12 = vmul.f32 %v1518_v10, %v112_v11 }
  0x84   :  { %v125_v13 = vsub.f32 %v1507_v0, %v123_v12 }
  0x86   :  { %v127_v14 = vmul.f32 %v125_v13, %v125_v13 }
  0x88   :  { %v129_v15 = vsel %vm109_vm0, %v127_v14, 0.0 }
  0x89   :  { %130 = vadd.xlane.f32.xlu1 %v129_v15  ;;  %v115_v16 = vpop.xlane.xlu0 %114 }
  0x8a   :  { %v124_v17 = vmul.f32 %v1518_v10, %v115_v16 }
  0x8c   :  { %v126_v18 = vsub.f32 %v1514_v2, %v124_v17 }
  0x8e   :  { %v128_v19 = vmul.f32 %v126_v18, %v126_v18 }
  0x90   :  { %v132_v20 = vsel %vm109_vm0, %v128_v19, 0.0 }
  0x91   :  { %133 = vadd.xlane.f32.xlu1 %v132_v20 }
  0xfc   :  { %v131_v22 = vpop.xlane.xlu1 %130 }
  0xfd   :  { %v135_v24 = vmul.f32 %v131_v22, %v1518_v10 }
  0xff   :  { %v137_v25 = vadd.f32 1e-05, %v135_v24 }
 0x101   :  { %1255 = vrsqrt.f32 %v137_v25  ;;  %vm145_vm3 = vweird.f32 %v137_v25 }
 0x104   :  { %v134_v26 = vpop.xlane.xlu1 %133 }
 0x105   :  { %v136_v27 = vmul.f32 %v134_v26, %v1518_v10 }
 0x107   :  { %v1256_v28 = vpop.eup %1255  ;;  %v138_v29 = vadd.f32 1e-05, %v136_v27 }
 0x108   :  { %v140_v30 = vmul.f32 %v1256_v28, %v137_v25  ;;  %vm146_vm2 = vweird.f32 %v1256_v28 }
 0x109   :  { %1257 = vrsqrt.f32 %v138_v29  ;;  %vm147_vm4 = vmor %vm145_vm3, %vm146_vm2  ;;  %vm155_vm6 = vweird.f32 %v138_v29 }
 0x10a   :  { %v141_v31 = vmul.f32 %v1256_v28, %v140_v30 }
 0x10c   :  { %v142_v32 = vmul.f32 0.5, %v141_v31 }
 0x10e   :  { %v143_v33 = vsub.f32 1.5, %v142_v32 }
 0x10f   :  { %v1258_v34 = vpop.eup %1257 }
 0x110   :  { %v144_v35 = vmul.f32 %v1256_v28, %v143_v33  ;;  %v150_v36 = vmul.f32 %v1258_v34, %v138_v29  ;;  %vm156_vm5 = vweird.f32 %v1258_v34 }
 0x111   :  { %vm157_vm7 = vmor %vm155_vm6, %vm156_vm5 }
 0x112   :  { %v151_v37 = vmul.f32 %v1258_v34, %v150_v36  ;;  %v148_v38 = vsel %vm147_vm4, %v1256_v28, %v144_v35 }
 0x113   :  { %v159_v41 = vmul.f32 %v148_v38, %v125_v13 }
 0x114   :  { %v152_v39 = vmul.f32 0.5, %v151_v37 }
 0x115   :  { %v164_v46 = vmul.f32 %v1245_v42, %v159_v41 }
 0x116   :  { %v153_v40 = vsub.f32 1.5, %v152_v39 }
 0x117   :  { %v169_v49 = vadd.f32 %v1246_v47, %v164_v46 }
 0x118   :  { %v154_v43 = vmul.f32 %v1258_v34, %v153_v40 }
 0x11a   :  { %v158_v44 = vsel %vm157_vm7, %v1258_v34, %v154_v43 }
 0x11b   :  { %v160_v45 = vmul.f32 %v158_v44, %v126_v18 }
 0x11d   :  { %v165_v48 = vmul.f32 %v1245_v42, %v160_v45 }
 0x11f   :  { %v170_v50 = vadd.f32 %v1246_v47, %v165_v48 }
 0x121   :  { %v171_v51 = vpack.c.bf16 %v170_v50, %v169_v49 }
 0x123   :  { %1150 = vmatmul.msk.bf16.vlgmr.msra.gmra.mxu0 %vm109_vm0, %v171_v51 }
 0x1a0   :  { %v199_v53 = vpop.f32.mrf.mxu0 }
 0x1a1   :  { %v200_v54 = vadd.f32 %v1247_v52, %v199_v53 }
 0x1a3   :  { %211 = vrot.lane.b32.xlu0 %v200_v54, %s1410_s17  ;;  %205 = vrot.lane.b32.xlu2 %v200_v54, %s1411_s18  ;;  %v224_v23 = vpack.c.bf16 %v200_v54, %v200_v54 }
 0x1a5   :  { %v233_v24 = vunpack.c.l.b16 %v224_v23 }
 0x1a7   :  { %v1569_v25 = vpack.c.b16 %v233_v24, %v233_v24 }
 0x1a8   :  { %v201_v55 = vpop.f32.mrf.mxu0 }
 0x1a9   :  { %v202_v56 = vadd.f32 %v1247_v52, %v201_v55 }
 0x1ab   :  { %215 = vrot.lane.b32.xlu1 %v202_v56, %s1411_s18  ;;  %208 = vrot.lane.b32.xlu2 %v200_v54, %s1412_s2  ;;  %v228_v7 = vpack.c.bf16 %v202_v56, %v202_v56 }
 0x1ad   :  { %v330_v11 = vunpack.c.l.b16 %v228_v7 }
 0x1af   :  { %v1555_v16 = vpack.c.b16 %v330_v11, %v330_v11 }
 0x1b3   :  { %218 = vrot.lane.b32.xlu2 %v202_v56, %s1412_s2 }
 0x1bb   :  { %221 = vrot.lane.b32.xlu2 %v202_v56, %s1410_s17 }
 0x1fd   :  { %v206_v57 = vpop.permute.xlu2 %205 }
 0x1fe   :  { %v225_v58 = vpack.c.bf16 %v206_v57, %v206_v57 }
 0x200   :  { %v258_v59 = vunpack.c.l.b16 %v225_v58 }
 0x202   :  { %v1541_v60 = vpack.c.b16 %v258_v59, %v258_v59 }
 0x204   :  { %260 = vrot.lane.b32.xlu2 %v1541_v60, %s1413_s19 }
 0x205   :  { %v209_v61 = vpop.permute.xlu2 %208 }
 0x206   :  { %v226_v62 = vpack.c.bf16 %v209_v61, %v209_v61 }
 0x208   :  { %v282_v63 = vunpack.c.l.b16 %v226_v62 }
 0x20a   :  { %v1545_v1 = vpack.c.b16 %v282_v63, %v282_v63 }
 0x20c   :  { %284 = vrot.lane.b32.xlu0 %v1545_v1, %s1413_s19 }
 0x20d   :  { %v219_v3 = vpop.permute.xlu2 %218 }
 0x20e   :  { %v230_v4 = vpack.c.bf16 %v219_v3, %v219_v3 }
 0x210   :  { %v378_v5 = vunpack.c.l.b16 %v230_v4 }
 0x212   :  { %v1549_v6 = vpack.c.b16 %v378_v5, %v378_v5 }
 0x214   :  { %380 = vrot.lane.b32.xlu0 %v1549_v6, %s1413_s19 }
 0x215   :  { %v212_v8 = vpop.permute.xlu0 %211  ;;  %v222_v12 = vpop.permute.xlu2 %221 }
 0x216   :  { %v227_v9 = vpack.c.bf16 %v212_v8, %v212_v8  ;;  %v231_v15 = vpack.c.bf16 %v222_v12, %v222_v12 }
 0x218   :  { %v306_v13 = vunpack.c.l.b16 %v227_v9  ;;  %v402_v18 = vunpack.c.l.b16 %v231_v15 }
 0x21a   :  { %v1553_v14 = vpack.c.b16 %v306_v13, %v306_v13  ;;  %v1561_v21 = vpack.c.b16 %v402_v18, %v402_v18 }
 0x21c   :  { %308 = vrot.lane.b32.xlu2 %v1553_v14, %s1413_s19  ;;  %332 = vrot.lane.b32.xlu0 %v1555_v16, %s1413_s19 }
 0x21d   :  { %v216_v17 = vpop.permute.xlu1 %215 }
 0x21e   :  { %v229_v19 = vpack.c.bf16 %v216_v17, %v216_v17 }
 0x220   :  { %v354_v20 = vunpack.c.l.b16 %v229_v19 }
 0x222   :  { %v1563_v22 = vpack.c.b16 %v354_v20, %v354_v20 }
 0x224   :  { %356 = vrot.lane.b32.xlu1 %v1563_v22, %s1413_s19  ;;  %404 = vrot.lane.b32.xlu2 %v1561_v21, %s1413_s19 }
 0x22c   :  { %235 = vrot.lane.b32.xlu1 %v1569_v25, %s1413_s19  ;;  %s1123_s19 = sshll.u32 %s1840_s14, 4  ;;  %s1110_s14 = sshll.u32 %s1839_s13, 4  ;;  %s1124_s19 = int_to_ptr.hbm [resolvable:$true] %s1123_s19  ;;  %s1111_s14 = int_to_ptr.hbm [resolvable:$true] %s1110_s14 }
 0x25e   :  { %v261_v26 = vpop.permute.xlu2 %260 }
 0x25f   :  { %v266_v27 = vsel %vm237_vm8, %v261_v26, 0 }
 0x260   :  { %275 = vmatpush.bf16.xpose.msra.mxu2 %v266_v27 }
 0x267   :  { %1152 = vmatmul.msk.bf16.vlgmr.msra.gmra.mxu2 %vm237_vm8, %v225_v58 }
 0x276   :  { %v309_v28 = vpop.permute.xlu2 %308 }
 0x277   :  { %v314_v29 = vsel %vm237_vm8, %v309_v28, 0 }
 0x278   :  { %323 = vmatpush.bf16.xpose.msrb.mxu0 %v314_v29 }
 0x27e   :  { %v285_v30 = vpop.permute.xlu0 %284  ;;  %v405_v31 = vpop.permute.xlu2 %404 }
 0x27f   :  { %v410_v32 = vsel %vm237_vm8, %v405_v31, 0  ;;  %1154 = vmatmul.msk.bf16.vlgmr.msrb.gmra.mxu0 %vm237_vm8, %v227_v9  ;;  %v290_v33 = vsel %vm237_vm8, %v285_v30, 0 }
 0x280   :  { %299 = vmatpush.bf16.xpose.msra.mxu3 %v290_v33  ;;  %419 = vmatpush.bf16.xpose.msra.mxu0 %v410_v32 }
 0x286   :  { %v381_v34 = vpop.permute.xlu0 %380 }
 0x287   :  { %1153 = vmatmul.msk.bf16.vlgmr.msra.gmra.mxu3 %vm237_vm8, %v226_v62  ;;  %v386_v35 = vsel %vm237_vm8, %v381_v34, 0 }
 0x288   :  { %395 = vmatpush.bf16.xpose.msrb.mxu3 %v386_v35 }
 0x28e   :  { %v333_v38 = vpop.permute.xlu0 %332 }
 0x28f   :  { %1158 = vmatmul.msk.bf16.vlgmr.msra.gmra.mxu0 %vm237_vm8, %v231_v15  ;;  %v338_v41 = vsel %vm237_vm8, %v333_v38, 0 }
 0x296   :  { %v357_v36 = vpop.permute.xlu1 %356 }
 0x297   :  { %1157 = vmatmul.msk.bf16.vlgmr.msrb.gmra.mxu3 %vm237_vm8, %v230_v4  ;;  %v362_v37 = vsel %vm237_vm8, %v357_v36, 0 }
 0x298   :  { %371 = vmatpush.bf16.xpose.msrb.mxu2 %v362_v37 }
 0x29e   :  { %v236_v39 = vpop.permute.xlu1 %235 }
 0x29f   :  { %1156 = vmatmul.msk.bf16.vlgmr.msrb.gmra.mxu2 %vm237_vm8, %v229_v19  ;;  %v242_v40 = vsel %vm237_vm8, %v236_v39, 0 }
 0x2a0   :  { %251 = vmatpush.bf16.xpose.msra.mxu1 %v242_v40 }
 0x2a7   :  { %1151 = vmatmul.msk.bf16.vlgmr.msra.gmra.mxu1 %vm237_vm8, %v224_v23 }
 0x2a8   :  { %347 = vmatpush.bf16.xpose.msrb.mxu1 %v338_v41 }
 0x2b7   :  { %1155 = vmatmul.msk.bf16.vlgmr.msrb.gmra.mxu1 %vm237_vm8, %v228_v7 }
 0x2ea   :  { %v277_v42 = vpop.f32.mrf.mxu2 }
 0x2eb   :  { %v428_v43 = vsel %vm237_vm8, %v277_v42, -inf }
 0x2ec   :  { %429 = vmax.xlane.f32.xlu2 %v428_v43 }
 0x2f2   :  { %v279_v44 = vpop.f32.mrf.mxu2 }
 0x2fc   :  { %v325_v45 = vpop.f32.mrf.mxu0 }
 0x2fd   :  { %v434_v46 = vsel %vm237_vm8, %v325_v45, -inf }
 0x2fe   :  { %435 = vmax.xlane.f32.xlu0 %v434_v46 }
 0x304   :  { %v327_v47 = vpop.f32.mrf.mxu0 }
 0x30a   :  { %v301_v48 = vpop.f32.mrf.mxu3 }
 0x30b   :  { %v431_v4 = vsel %vm237_vm8, %v301_v48, -inf }
 0x30c   :  { %v421_v49 = vpop.f32.mrf.mxu0 }
 0x30d   :  { %v446_v50 = vsel %vm237_vm8, %v421_v49, -inf }
 0x30e   :  { %447 = vmax.xlane.f32.xlu0 %v446_v50 }
 0x312   :  { %v303_v51 = vpop.f32.mrf.mxu3 }
 0x314   :  { %v423_v52 = vpop.f32.mrf.mxu0 }
 0x31a   :  { %v397_v53 = vpop.f32.mrf.mxu3 }
 0x322   :  { %v373_v54 = vpop.f32.mrf.mxu2  ;;  %v399_v55 = vpop.f32.mrf.mxu3  ;;  %679 = vrot.lane.b32.xlu0 %v1545_v1, %s1407_s23  ;;  %v443_v1 = vsel %vm237_vm8, %v397_v53, -inf }
 0x323   :  { %v440_v61 = vsel %vm237_vm8, %v373_v54, -inf }
 0x324   :  { %v253_v56 = vpop.f32.mrf.mxu1 }
 0x325   :  { %v425_v57 = vsel %vm237_vm8, %v253_v56, -inf }
 0x326   :  { %426 = vmax.xlane.f32.xlu2 %v425_v57 }
 0x32a   :  { %v375_v58 = vpop.f32.mrf.mxu2 }
 0x32c   :  { %v255_v59 = vpop.f32.mrf.mxu1 }
 0x32e   :  { %441 = vmax.xlane.f32.xlu2 %v440_v61 }
 0x334   :  { %v1596_v62 = vpop.f32.mrf.mxu1 }
 0x335   :  { %v437_v63 = vsel %vm237_vm8, %v1596_v62, -inf }
 0x336   :  { %438 = vmax.xlane.f32.xlu1 %v437_v63 }
 0x33c   :  { %v351_v3 = vpop.f32.mrf.mxu1 }
 0x33e   :  { %432 = vmax.xlane.f32.xlu1 %v431_v4 }
 0x346   :  { %444 = vmax.xlane.f32.xlu1 %v443_v1 }
 0x35f   :  { %658 = vrot.lane.b32.xlu1 %v1541_v60, %s1407_s23  ;;  %v430_v8 = vpop.xlane.xlu2 %429 }
 0x360   :  { %v450_v11 = vsub.f32 %v277_v42, %v430_v8 }
 0x362   :  { %v459_v12 = vmul.f32 1.442695, %v450_v11 }
 0x371   :  { %v436_v5 = vpop.xlane.xlu0 %435 }
 0x372   :  { %v452_v7 = vsub.f32 %v325_v45, %v436_v5 }
 0x374   :  { %v463_v9 = vmul.f32 1.442695, %v452_v7 }
 0x376   :  { %1259 = vpow2.f32 %v463_v9 }
 0x377   :  { %1261 = vpow2.f32 %v459_v12 }
 0x37c   :  { %v1604_v13 = vpop.eup %1259 }
 0x37d   :  { %v482_v15 = vsel %vm237_vm8, %v1604_v13, 0.0  ;;  %v1608_v20 = vpop.eup %1261 }
 0x37e   :  { %483 = vadd.xlane.f32.xlu2 %v482_v15  ;;  %v476_v60 = vsel %vm237_vm8, %v1608_v20, 0.0 }
 0x381   :  { %v448_v17 = vpop.xlane.xlu0 %447 }
 0x382   :  { %v456_v18 = vsub.f32 %v421_v49, %v448_v17 }
 0x384   :  { %v471_v19 = vmul.f32 1.442695, %v456_v18 }
 0x386   :  { %1263 = vpow2.f32 %v471_v19 }
 0x389   :  { %477 = vadd.xlane.f32.xlu1 %v476_v60 }
 0x38c   :  { %v1612_v23 = vpop.eup %1263 }
 0x38d   :  { %v494_v24 = vsel %vm237_vm8, %v1612_v23, 0.0 }
 0x38e   :  { %495 = vadd.xlane.f32.xlu2 %v494_v24 }
 0x394   :  { %v680_v26 = vpop.permute.xlu0 %679 }
 0x395   :  { %v685_v27 = vsel %vm641_vm9, %v680_v26, 0 }
 0x396   :  { %694 = vmatpush.bf16.msra.mxu3 %v685_v27 }
 0x399   :  { %v427_v28 = vpop.xlane.xlu2 %426 }
 0x39a   :  { %v449_v37 = vsub.f32 %v253_v56, %v427_v28 }
 0x3a1   :  { %v442_v30 = vpop.xlane.xlu2 %441 }
 0x3a2   :  { %763 = vrot.lane.b32.xlu1 %v1549_v6, %s1407_s23  ;;  %v454_v33 = vsub.f32 %v373_v54, %v442_v30  ;;  %v457_v6 = vmul.f32 1.442695, %v449_v37 }
 0x3a4   :  { %v467_v35 = vmul.f32 1.442695, %v454_v33 }
 0x3a9   :  { %v439_v29 = vpop.xlane.xlu1 %438 }
 0x3aa   :  { %v453_v50 = vsub.f32 %v1596_v62, %v439_v29 }
 0x3ac   :  { %v465_v51 = vmul.f32 1.442695, %v453_v50 }
 0x3b1   :  { %v433_v31 = vpop.xlane.xlu1 %432 }
 0x3b2   :  { %v451_v32 = vsub.f32 %v301_v48, %v433_v31 }
 0x3b4   :  { %v461_v34 = vmul.f32 1.442695, %v451_v32 }
 0x3b6   :  { %1265 = vpow2.f32 %v461_v34 }
 0x3b7   :  { %1267 = vpow2.f32 %v467_v35 }
 0x3b9   :  { %v445_v36 = vpop.xlane.xlu1 %444 }
 0x3ba   :  { %v455_v38 = vsub.f32 %v397_v53, %v445_v36 }
 0x3bc   :  { %v1619_v39 = vpop.eup %1265  ;;  %v469_v40 = vmul.f32 1.442695, %v455_v38 }
 0x3bd   :  { %v479_v41 = vsel %vm237_vm8, %v1619_v39, 0.0  ;;  %v1623_v42 = vpop.eup %1267 }
 0x3be   :  { %1269 = vpow2.f32 %v469_v40  ;;  %480 = vadd.xlane.f32.xlu0 %v479_v41  ;;  %v488_v44 = vsel %vm237_vm8, %v1623_v42, 0.0 }
 0x3bf   :  { %1271 = vpow2.f32 %v457_v6 }
 0x3c0   :  { %1273 = vpow2.f32 %v465_v51 }
 0x3c4   :  { %v1625_v43 = vpop.eup %1269 }
 0x3c5   :  { %v491_v45 = vsel %vm237_vm8, %v1625_v43, 0.0  ;;  %v1631_v46 = vpop.eup %1271 }
 0x3c6   :  { %489 = vadd.xlane.f32.xlu0 %v488_v44  ;;  %492 = vadd.xlane.f32.xlu2 %v491_v45  ;;  %v473_v47 = vsel %vm237_vm8, %v1631_v46, 0.0  ;;  %v1647_v53 = vpop.eup %1273 }
 0x3cc   :  { %474 = vadd.xlane.f32.xlu1 %v473_v47 }
 0x3d1   :  { %v659_v48 = vpop.permute.xlu1 %658 }
 0x3d2   :  { %v664_v49 = vsel %vm641_vm9, %v659_v48, 0 }
 0x3d3   :  { %673 = vmatpush.bf16.msra.mxu2 %v664_v49 }
 0x3da   :  { %742 = vrot.lane.b32.xlu0 %v1563_v22, %s1407_s23 }
 0x3de   :  { %700 = vrot.lane.b32.xlu2 %v1553_v14, %s1407_s23 }
 0x3e2   :  { %784 = vrot.lane.b32.xlu0 %v1561_v21, %s1407_s23  ;;  %v485_v21 = vsel %vm237_vm8, %v1647_v53, 0.0 }
 0x3ea   :  { %636 = vrot.lane.b32.xlu0 %v1569_v25, %s1407_s23 }
 0x3f1   :  { %v484_v4 = vpop.xlane.xlu2 %483 }
 0x3f2   :  { %721 = vrot.lane.b32.xlu0 %v1555_v16, %s1407_s23  ;;  %v553_v17 = vand.u32 2147483648, %v484_v4  ;;  %vm547_vm15 = vweird.f32 %v484_v4  ;;  %v551_v19 = vand.u32 2147483647, %v484_v4  ;;  %s1420_s23 = smov [#allocation7]  }
 0x3f3   :  { %s1108_s24 = sshll.u32 %s1420_s23, 4  ;;  %s1109_s24 = int_to_ptr.vmem [resolvable:$true] %s1108_s24 }
 0x3f4   :  { %v554_v28 = vor.u32 1.1754944e-38, %v553_v17  ;;  %vm552_vm2 = vcmp.eq.f32.partialorder %v551_v19, 8.507059e+37 }
 0x3fc   :  { %v478_v52 = vpop.xlane.xlu1 %477 }
 0x3fd   :  { %1275 = vrcp.f32 %v478_v52  ;;  %v523_v55 = vand.u32 2147483648, %v478_v52  ;;  %v521_v56 = vand.u32 2147483647, %v478_v52  ;;  %vm517_vm11 = vweird.f32 %v478_v52 }
 0x3fe   :  { %1277 = vrcp.f32 %v484_v4 }
 0x3ff   :  { %v524_v57 = vor.u32 1.1754944e-38, %v523_v55  ;;  %vm522_vm13 = vcmp.eq.f32.partialorder %v521_v56, 8.507059e+37 }
 0x401   :  { %v1658_v8 = vpop.xlane.xlu2 %495 }
 0x402   :  { %1279 = vrcp.f32 %v1658_v8  ;;  %vm607_vm7 = vweird.f32 %v1658_v8  ;;  %v611_v56 = vand.u32 2147483647, %v1658_v8 }
 0x403   :  { %v1276_v22 = vpop.eup %1275 }
 0x404   :  { %v513_v54 = vmul.f32 %v1276_v22, %v478_v52  ;;  %vm518_vm10 = vweird.f32 %v1276_v22  ;;  %v1278_v1 = vpop.eup %1277 }
 0x405   :  { %vm519_vm12 = vmor %vm517_vm11, %vm518_vm10  ;;  %v543_v5 = vmul.f32 %v1278_v1, %v484_v4  ;;  %vm548_vm14 = vweird.f32 %v1278_v1 }
 0x406   :  { %v514_v14 = vsub.f32 1.0, %v513_v54  ;;  %vm549_vm1 = vmor %vm547_vm15, %vm548_vm14 }
 0x407   :  { %486 = vadd.xlane.f32.xlu2 %v485_v21  ;;  %v544_v7 = vsub.f32 1.0, %v543_v5  ;;  %v613_v5 = vand.u32 2147483648, %v1658_v8 }
 0x408   :  { %v515_v25 = vmul.f32 %v1276_v22, %v514_v14  ;;  %v1661_v15 = vpop.eup %1279 }
 0x409   :  { %v545_v11 = vmul.f32 %v1278_v1, %v544_v7  ;;  %v603_v27 = vmul.f32 %v1661_v15, %v1658_v8  ;;  %vm608_vm11 = vweird.f32 %v1661_v15 }
 0x40a   :  { %v516_v16 = vadd.f32 %v1276_v22, %v515_v25 }
 0x40b   :  { %v546_v12 = vadd.f32 %v1278_v1, %v545_v11  ;;  %v604_v34 = vsub.f32 1.0, %v603_v27 }
 0x40c   :  { %v520_v58 = vsel %vm519_vm12, %v1276_v22, %v516_v16 }
 0x40d   :  { %v525_v59 = vsel %vm522_vm13, %v524_v57, %v520_v58  ;;  %v550_v26 = vsel %vm549_vm1, %v1278_v1, %v546_v12  ;;  %v605_v47 = vmul.f32 %v1661_v15, %v604_v34 }
 0x40e   :  { %v1652_v61 = vmul.f32 %v1608_v20, %v525_v59  ;;  %v555_v31 = vsel %vm552_vm2, %v554_v28, %v550_v26  ;;  %v614_v28 = vor.u32 1.1754944e-38, %v613_v5 }
 0x40f   :  { %v1671_v38 = vmul.f32 %v1604_v13, %v555_v31 }
 0x410   :  { %v629_v62 = vpack.c.bf16 %v1652_v61, %v1652_v61 }
 0x411   :  { %v631_v54 = vpack.c.bf16 %v1671_v38, %v1671_v38 }
 0x412   :  { %1160 = vmatmul.msk.bf16.vlgmr.msra.gmra.mxu2 %vm237_vm8, %v629_v62 }
 0x414   :  { %v764_v63 = vpop.permute.xlu1 %763 }
 0x415   :  { %v769_v3 = vsel %vm641_vm9, %v764_v63, 0 }
 0x416   :  { %778 = vmatpush.bf16.msrb.mxu3 %v769_v3 }
 0x431   :  { %v481_v9 = vpop.xlane.xlu0 %480 }
 0x432   :  { %1281 = vrcp.f32 %v481_v9  ;;  %v538_v30 = vand.u32 2147483648, %v481_v9  ;;  %v536_v33 = vand.u32 2147483647, %v481_v9  ;;  %vm532_vm4 = vweird.f32 %v481_v9 }
 0x434   :  { %v539_v40 = vor.u32 1.1754944e-38, %v538_v30  ;;  %vm537_vm6 = vcmp.eq.f32.partialorder %v536_v33, 8.507059e+37 }
 0x438   :  { %v1282_v18 = vpop.eup %1281 }
 0x439   :  { %v528_v20 = vmul.f32 %v1282_v18, %v481_v9  ;;  %v490_v60 = vpop.xlane.xlu0 %489  ;;  %v1663_v24 = vpop.xlane.xlu2 %492  ;;  %vm533_vm3 = vweird.f32 %v1282_v18 }
 0x43a   :  { %1283 = vrcp.f32 %v490_v60  ;;  %vm534_vm5 = vmor %vm532_vm4, %vm533_vm3  ;;  %v583_v52 = vand.u32 2147483648, %v490_v60  ;;  %v581_v21 = vand.u32 2147483647, %v490_v60  ;;  %vm577_vm12 = vweird.f32 %v490_v60 }
 0x43b   :  { %v529_v29 = vsub.f32 1.0, %v528_v20  ;;  %1285 = vrcp.f32 %v1663_v24  ;;  %vm592_vm15 = vweird.f32 %v1663_v24  ;;  %v598_v63 = vand.u32 2147483648, %v1663_v24  ;;  %vm1706_vm3 = vmor %vm607_vm7, %vm608_vm11 }
 0x43c   :  { %v584_v59 = vor.u32 1.1754944e-38, %v583_v52  ;;  %vm582_vm1 = vcmp.eq.f32.partialorder %v581_v21, 8.507059e+37  ;;  %v596_v4 = vand.u32 2147483647, %v1663_v24 }
 0x43d   :  { %v530_v32 = vmul.f32 %v1282_v18, %v529_v29 }
 0x43f   :  { %v531_v35 = vadd.f32 %v1282_v18, %v530_v32  ;;  %v1668_v36 = vpop.xlane.xlu1 %474 }
 0x440   :  { %v1284_v37 = vpop.eup %1283  ;;  %1287 = vrcp.f32 %v1668_v36  ;;  %v506_v11 = vand.u32 2147483647, %v1668_v36  ;;  %v508_v12 = vand.u32 2147483648, %v1668_v36 }
 0x441   :  { %v1286_v41 = vpop.eup %1285  ;;  %v535_v6 = vsel %vm534_vm5, %v1282_v18, %v531_v35  ;;  %v573_v44 = vmul.f32 %v1284_v37, %v490_v60  ;;  %v701_v45 = vpop.permute.xlu2 %700  ;;  %vm578_vm10 = vweird.f32 %v1284_v37  ;;  %vm597_vm5 = vcmp.eq.f32.partialorder %v596_v4, 8.507059e+37 }
 0x442   :  { %v540_v48 = vsel %vm537_vm6, %v539_v40, %v535_v6  ;;  %v588_v49 = vmul.f32 %v1286_v41, %v1663_v24  ;;  %v706_v13 = vsel %vm641_vm9, %v701_v45, 0  ;;  %vm593_vm13 = vweird.f32 %v1286_v41  ;;  %vm579_vm14 = vmor %vm577_vm12, %vm578_vm10 }
 0x443   :  { %v1677_v50 = vmul.f32 %v1619_v39, %v540_v48  ;;  %v574_v51 = vsub.f32 1.0, %v573_v44  ;;  %715 = vmatpush.bf16.msrb.mxu0 %v706_v13  ;;  %v606_v39 = vadd.f32 %v1661_v15, %v605_v47  ;;  %vm1696_vm2 = vmor %vm592_vm15, %vm593_vm13  ;;  %v599_v24 = vor.u32 1.1754944e-38, %v598_v63 }
 0x444   :  { %v589_v22 = vsub.f32 1.0, %v588_v49  ;;  %vm502_vm6 = vweird.f32 %v1668_v36  ;;  %v509_v29 = vor.u32 1.1754944e-38, %v508_v12  ;;  %vm612_vm10 = vcmp.eq.f32.partialorder %v611_v56, 8.507059e+37 }
 0x445   :  { %v575_v14 = vmul.f32 %v1284_v37, %v574_v51  ;;  %v630_v55 = vpack.c.bf16 %v1677_v50, %v1677_v50  ;;  %v610_v60 = vsel %vm1706_vm3, %v1661_v15, %v606_v39  ;;  %vm507_vm11 = vcmp.eq.f32.partialorder %v506_v11, 8.507059e+37 }
 0x446   :  { %v1288_v25 = vpop.eup %1287  ;;  %v590_v16 = vmul.f32 %v1286_v41, %v589_v22  ;;  %1162 = vmatmul.msk.bf16.vlgmr.msrb.gmra.mxu0 %vm237_vm8, %v631_v54  ;;  %v615_v15 = vsel %vm612_vm10, %v614_v28, %v610_v60 }
 0x447   :  { %v576_v57 = vadd.f32 %v1284_v37, %v575_v14  ;;  %v498_v58 = vmul.f32 %v1288_v25, %v1668_v36  ;;  %1161 = vmatmul.msk.bf16.vlgmr.msra.gmra.mxu3 %vm237_vm8, %v630_v55  ;;  %vm503_vm4 = vweird.f32 %v1288_v25  ;;  %v616_v35 = vmul.f32 %v1612_v23, %v615_v15 }
 0x448   :  { %v591_v62 = vadd.f32 %v1286_v41, %v590_v16  ;;  %vm504_vm7 = vmor %vm502_vm6, %vm503_vm4 }
 0x449   :  { %v580_v3 = vsel %vm579_vm14, %v1284_v37, %v576_v57  ;;  %v499_v1 = vsub.f32 1.0, %v498_v58  ;;  %v635_v44 = vpack.c.bf16 %v616_v35, %v616_v35 }
 0x44a   :  { %v585_v7 = vsel %vm582_vm1, %v584_v59, %v580_v3  ;;  %v595_v19 = vsel %vm1696_vm2, %v1286_v41, %v591_v62  ;;  %vm820_vm1 = vcmask 195584  }
 0x44b   :  { %v1711_v18 = vmul.f32 %v1623_v42, %v585_v7  ;;  %v500_v20 = vmul.f32 %v1288_v25, %v499_v1  ;;  %v600_v42 = vsel %vm597_vm5, %v599_v24, %v595_v19 }
 0x44c   :  { %v743_v26 = vpop.permute.xlu0 %742  ;;  %v601_v33 = vmul.f32 %v1625_v43, %v600_v42 }
 0x44d   :  { %v501_v8 = vadd.f32 %v1288_v25, %v500_v20  ;;  %v748_v27 = vsel %vm641_vm9, %v743_v26, 0  ;;  %v633_v31 = vpack.c.bf16 %v1711_v18, %v1711_v18 }
 0x44e   :  { %757 = vmatpush.bf16.msrb.mxu2 %v748_v27  ;;  %v634_v6 = vpack.c.bf16 %v601_v33, %v601_v33  ;;  %v1206_v27 = vld [vmem:[%s1831_s5] sm:$0xff] }
 0x44f   :  { %v505_v30 = vsel %vm504_vm7, %v1288_v25, %v501_v8  ;;  %v1207_v8 = vld [vmem:[%s1831_s5 + $0x8] sm:$0xff] }
 0x450   :  { %v510_v32 = vsel %vm507_vm11, %v509_v29, %v505_v30 }
 0x451   :  { %v511_v34 = vmul.f32 %v1631_v46, %v510_v32  ;;  %1164 = vmatmul.msk.bf16.vlgmr.msrb.gmra.mxu2 %vm237_vm8, %v633_v31 }
 0x453   :  { %v617_v36 = vadd.f32 %v1652_v61, %v511_v34  ;;  %v628_v45 = vpack.c.bf16 %v511_v34, %v511_v34 }
 0x454   :  { %v785_v37 = vpop.permute.xlu0 %784 }
 0x455   :  { %v618_v40 = vadd.f32 %v617_v36, %v1677_v50  ;;  %v790_v41 = vsel %vm641_vm9, %v785_v37, 0 }
 0x456   :  { %799 = vmatpush.bf16.msra.mxu0 %v790_v41 }
 0x457   :  { %1165 = vmatmul.msk.bf16.vlgmr.msrb.gmra.mxu3 %vm237_vm8, %v634_v6  ;;  %v619_v43 = vadd.f32 %v618_v40, %v1671_v38 }
 0x459   :  { %1166 = vmatmul.msk.bf16.vlgmr.msra.gmra.mxu0 %vm237_vm8, %v635_v44  ;;  %v620_v46 = vmul.f32 0.25, %v619_v43  ;;  %v1248_v43 = vld [vmem:[%s1832_s6] ss:$0 sm:$0xff] }
 0x45b   :  { %621 = vst.msk [vmem:[#allocation8] sm:$0xff] %vm237_vm8, %v620_v46 }
 0x45c   :  { %v637_v23 = vpop.permute.xlu0 %636 }
 0x45d   :  { %v643_v61 = vsel %vm641_vm9, %v637_v23, 0 }
 0x45e   :  { %652 = vmatpush.bf16.msra.mxu1 %v643_v61 }
 0x461   :  { %1159 = vmatmul.msk.bf16.vlgmr.msra.gmra.mxu1 %vm237_vm8, %v628_v45 }
 0x464   :  { %v722_v47 = vpop.permute.xlu0 %721 }
 0x465   :  { %v727_v48 = vsel %vm641_vm9, %v722_v47, 0  ;;  %vm818_vm9 = vcmask 130048  }
 0x466   :  { %736 = vmatpush.bf16.msrb.mxu1 %v727_v48 }
 0x46a   :  { %862 = vmatpush.bf16.msra.mxu1 %v1207_v8 }
 0x46e   :  { %863 = vmatpush.bf16.msra.mxu1 %v1206_v27 }
 0x47a   :  { %v487_v49 = vpop.xlane.xlu2 %486 }
 0x47b   :  { %1289 = vrcp.f32 %v487_v49  ;;  %v568_v13 = vand.u32 2147483648, %v487_v49  ;;  %v566_v22 = vand.u32 2147483647, %v487_v49  ;;  %vm562_vm13 = vweird.f32 %v487_v49 }
 0x47d   :  { %v569_v14 = vor.u32 1.1754944e-38, %v568_v13  ;;  %vm567_vm15 = vcmp.eq.f32.partialorder %v566_v22, 8.507059e+37 }
 0x481   :  { %v1290_v50 = vpop.eup %1289 }
 0x482   :  { %v558_v38 = vmul.f32 %v1290_v50, %v487_v49  ;;  %vm563_vm12 = vweird.f32 %v1290_v50 }
 0x483   :  { %vm564_vm14 = vmor %vm562_vm13, %vm563_vm12 }
 0x484   :  { %v559_v51 = vsub.f32 1.0, %v558_v38 }
 0x486   :  { %v560_v52 = vmul.f32 %v1290_v50, %v559_v51 }
 0x488   :  { %v561_v54 = vadd.f32 %v1290_v50, %v560_v52 }
 0x48a   :  { %v565_v21 = vsel %vm564_vm14, %v1290_v50, %v561_v54 }
 0x48b   :  { %v570_v55 = vsel %vm567_vm15, %v569_v14, %v565_v21 }
 0x48c   :  { %v571_v25 = vmul.f32 %v1647_v53, %v570_v55 }
 0x48e   :  { %v622_v39 = vadd.f32 %v1711_v18, %v571_v25  ;;  %v632_v56 = vpack.c.bf16 %v571_v25, %v571_v25  ;;  %v1209_v25 = vld [vmem:[#allocation5 + $0x8] sm:$0xff] }
 0x48f   :  { %951 = vmatpush.bf16.msra.mxu2 %v1209_v25 }
 0x490   :  { %v623_v16 = vadd.f32 %v622_v39, %v601_v33  ;;  %1163 = vmatmul.msk.bf16.vlgmr.msrb.gmra.mxu1 %vm237_vm8, %v632_v56 }
 0x492   :  { %v624_v57 = vadd.f32 %v623_v16, %v616_v35  ;;  %v1208_v16 = vld [vmem:[#allocation5] sm:$0xff] }
 0x493   :  { %952 = vmatpush.bf16.msra.mxu2 %v1208_v16  ;;  %v1212_v16 = vld [vmem:[%s1837_s11 + $0x10] sm:$0xff] }
 0x494   :  { %v625_v58 = vmul.f32 0.25, %v624_v57 }
 0x495   :  { %v675_v59 = vpop.f32.mrf.mxu2 }
 0x496   :  { %627 = vst.msk [vmem:[#allocation8 + $0x8] sm:$0xff] %vm237_vm8, %v625_v58 }
 0x49d   :  { %v677_v62 = vpop.f32.mrf.mxu2 }
 0x4c3   :  { %v717_v63 = vpop.f32.mrf.mxu0 }
 0x4ca   :  { %v696_v3 = vpop.f32.mrf.mxu3 }
 0x4cb   :  { %v719_v4 = vpop.f32.mrf.mxu0 }
 0x4d2   :  { %v698_v1 = vpop.f32.mrf.mxu3 }
 0x4d4   :  { %v759_v5 = vpop.f32.mrf.mxu2 }
 0x4d5   :  { %v1230_v7 = vpack.i.bf16 %v759_v5, %v675_v59 }
 0x4d6   :  { %v801_v9 = vpop.f32.mrf.mxu0 }
 0x4d7   :  { %1231 = vrot.lane.b32.xlu0 %v1230_v7, %s1414_s4  ;;  %v1240_v20 = vpack.i.bf16 %v801_v9, %v717_v63 }
 0x4da   :  { %v780_v53 = vpop.f32.mrf.mxu3 }
 0x4db   :  { %v1235_v12 = vpack.i.bf16 %v780_v53, %v696_v3 }
 0x4dc   :  { %v761_v11 = vpop.f32.mrf.mxu2 }
 0x4de   :  { %v654_v17 = vpop.f32.mrf.mxu1  ;;  %v803_v18 = vpop.f32.mrf.mxu0 }
 0x4df   :  { %1236 = vrot.lane.b32.xlu0 %v1235_v12, %s1415_s20  ;;  %s1419_s20 = smov 128  }
 0x4e2   :  { %v782_v19 = vpop.f32.mrf.mxu3 }
 0x4e6   :  { %v656_v60 = vpop.f32.mrf.mxu1 }
 0x4e7   :  { %1241 = vrot.lane.b32.xlu0 %v1240_v20, %s1416_s21  ;;  %v1250_v60 = vld [vmem:[%s1834_s8] ss:$0 sm:$0xff] }
 0x50d   :  { %v738_v24 = vpop.f32.mrf.mxu1 }
 0x515   :  { %v740_v26 = vpop.f32.mrf.mxu1 }
 0x549   :  { %v1232_v28 = vpop.permute.xlu0 %1231 }
 0x54a   :  { %v1234_v29 = vunpack.i.h.bf16 %v1232_v28  ;;  %v1233_v30 = vunpack.i.l.bf16 %v1232_v28 }
 0x54c   :  { %v817_v33 = vsel %vm237_vm8, %v654_v17, %v1233_v30  ;;  %v834_v34 = vsel %vm237_vm8, %v738_v24, %v1234_v29  ;;  %v1417_v29 = vmov 1.4142135  }
 0x551   :  { %v1237_v42 = vpop.permute.xlu0 %1236 }
 0x552   :  { %v1239_v31 = vunpack.i.h.bf16 %v1237_v42  ;;  %v1238_v15 = vunpack.i.l.bf16 %v1237_v42 }
 0x554   :  { %v819_v37 = vsel %vm818_vm9, %v817_v33, %v1238_v15  ;;  %v835_v40 = vsel %vm818_vm9, %v834_v34, %v1239_v31  ;;  %v1251_v34 = vld [vmem:[%s1836_s10] ss:$0 sm:$0xff] }
 0x559   :  { %v1242_v32 = vpop.permute.xlu0 %1241 }
 0x55a   :  { %v1244_v35 = vunpack.i.h.bf16 %v1242_v32  ;;  %v1243_v36 = vunpack.i.l.bf16 %v1242_v32 }
 0x55c   :  { %v821_v41 = vsel %vm820_vm1, %v819_v37, %v1243_v36  ;;  %v836_v6 = vsel %vm820_vm1, %v835_v40, %v1244_v35 }
 0x55d   :  { %v837_v44 = vpack.c.bf16 %v836_v6, %v821_v41 }
 0x55f   :  { %1175 = vmatmul.msk.bf16.vlgmr.msra.gmra.mxu1 %vm109_vm0, %v837_v44 }
 0x5dc   :  { %v865_v46 = vpop.f32.mrf.mxu1 }
 0x5dd   :  { %v866_v23 = vadd.f32 %v1248_v43, %v865_v46 }
 0x5df   :  { %v1754_v61 = vadd.f32 %v866_v23, %v1507_v0 }
 0x5e1   :  { %v872_v45 = vsel %vm109_vm0, %v1754_v61, 0.0 }
 0x5e2   :  { %873 = vadd.xlane.f32.xlu1 %v872_v45 }
 0x5e4   :  { %v867_v47 = vpop.f32.mrf.mxu1 }
 0x5e5   :  { %v868_v48 = vadd.f32 %v1248_v43, %v867_v47 }
 0x5e7   :  { %v1759_v49 = vadd.f32 %v868_v48, %v1514_v2 }
 0x5e9   :  { %v875_v50 = vsel %vm109_vm0, %v1759_v49, 0.0 }
 0x5ea   :  { %876 = vadd.xlane.f32.xlu0 %v875_v50 }
 0x655   :  { %v874_v38 = vpop.xlane.xlu1 %873 }
 0x656   :  { %v878_v51 = vmul.f32 %v874_v38, %v1518_v10 }
 0x658   :  { %v880_v13 = vsub.f32 %v1754_v61, %v878_v51 }
 0x65a   :  { %v882_v0 = vmul.f32 %v880_v13, %v880_v13 }
 0x65c   :  { %v884_v52 = vsel %vm109_vm0, %v882_v0, 0.0 }
 0x65d   :  { %v877_v22 = vpop.xlane.xlu0 %876  ;;  %885 = vadd.xlane.f32.xlu2 %v884_v52 }
 0x65e   :  { %v879_v54 = vmul.f32 %v877_v22, %v1518_v10 }
 0x660   :  { %v881_v14 = vsub.f32 %v1759_v49, %v879_v54 }
 0x662   :  { %v883_v2 = vmul.f32 %v881_v14, %v881_v14 }
 0x664   :  { %v887_v21 = vsel %vm109_vm0, %v883_v2, 0.0 }
 0x665   :  { %888 = vadd.xlane.f32.xlu1 %v887_v21 }
 0x6d0   :  { %v886_v55 = vpop.xlane.xlu2 %885 }
 0x6d1   :  { %v890_v39 = vmul.f32 %v886_v55, %v1518_v10 }
 0x6d3   :  { %v892_v56 = vadd.f32 1e-05, %v890_v39 }
 0x6d5   :  { %1291 = vrsqrt.f32 %v892_v56  ;;  %vm900_vm2 = vweird.f32 %v892_v56 }
 0x6d8   :  { %v889_v57 = vpop.xlane.xlu1 %888 }
 0x6d9   :  { %v891_v58 = vmul.f32 %v889_v57, %v1518_v10  ;;  %v1249_v10 = vld [vmem:[%s1833_s7] ss:$0 sm:$0xff] }
 0x6db   :  { %v1292_v59 = vpop.eup %1291  ;;  %v893_v62 = vadd.f32 1e-05, %v891_v58 }
 0x6dc   :  { %v895_v63 = vmul.f32 %v1292_v59, %v892_v56  ;;  %vm901_vm8 = vweird.f32 %v1292_v59 }
 0x6dd   :  { %1293 = vrsqrt.f32 %v893_v62  ;;  %vm902_vm3 = vmor %vm900_vm2, %vm901_vm8  ;;  %vm910_vm5 = vweird.f32 %v893_v62  ;;  %vm1082_vm8 = vcmask 523264  }
 0x6de   :  { %v896_v3 = vmul.f32 %v1292_v59, %v895_v63  ;;  %1295 = vrcp.f32 %v1417_v29 }
 0x6e0   :  { %v897_v4 = vmul.f32 0.5, %v896_v3 }
 0x6e2   :  { %v898_v1 = vsub.f32 1.5, %v897_v4  ;;  %v1211_v4 = vld [vmem:[%s1837_s11 + $0x8] sm:$0xff] }
 0x6e3   :  { %v1294_v5 = vpop.eup %1293 }
 0x6e4   :  { %v899_v7 = vmul.f32 %v1292_v59, %v898_v1  ;;  %v905_v9 = vmul.f32 %v1294_v5, %v893_v62  ;;  %vm911_vm4 = vweird.f32 %v1294_v5  ;;  %v1296_v30 = vpop.eup %1295 }
 0x6e5   :  { %vm912_vm6 = vmor %vm910_vm5, %vm911_vm4  ;;  %v962_v31 = vmul.f32 1.4142135, %v1296_v30  ;;  %vm966_vm7 = vweird.f32 %v1296_v30 }
 0x6e6   :  { %v906_v53 = vmul.f32 %v1294_v5, %v905_v9  ;;  %v903_v11 = vsel %vm902_vm3, %v1292_v59, %v899_v7 }
 0x6e7   :  { %v914_v18 = vmul.f32 %v903_v11, %v880_v13  ;;  %v963_v15 = vsub.f32 1.0, %v962_v31  ;;  %v1210_v11 = vld [vmem:[%s1837_s11] sm:$0xff] }
 0x6e8   :  { %v907_v12 = vmul.f32 0.5, %v906_v53 }
 0x6e9   :  { %v919_v24 = vmul.f32 %v1249_v10, %v914_v18  ;;  %v964_v32 = vmul.f32 %v1296_v30, %v963_v15 }
 0x6ea   :  { %v908_v17 = vsub.f32 1.5, %v907_v12 }
 0x6eb   :  { %v924_v27 = vadd.f32 %v1250_v60, %v919_v24  ;;  %v965_v33 = vadd.f32 %v1296_v30, %v964_v32 }
 0x6ec   :  { %v909_v19 = vmul.f32 %v1294_v5, %v908_v17 }
 0x6ed   :  { %v967_v36 = vsel %vm966_vm7, %v1296_v30, %v965_v33 }
 0x6ee   :  { %v913_v20 = vsel %vm912_vm6, %v1294_v5, %v909_v19 }
 0x6ef   :  { %v915_v26 = vmul.f32 %v913_v20, %v881_v14  ;;  %v1213_v14 = vld [vmem:[%s1837_s11 + $0x18] sm:$0xff]  ;;  %s1418_s11 = smov [#allocation8]  }
 0x6f0   :  { %1090 = vmatpush.bf16.msra.mxu3 %v1213_v14  ;;  %s1121_s17 = sshll.u32 %s1418_s11, 4  ;;  %s1122_s17 = int_to_ptr.vmem [resolvable:$true] %s1121_s17 }
 0x6f1   :  { %v920_v8 = vmul.f32 %v1249_v10, %v915_v26  ;;  %1129 = dma.vmem_to_hbm [thread:$0]  %s1122_s17, 256, %s1124_s19, [#allocation9], %s1419_s20, %s1419_s20, %s1414_s4  }
 0x6f3   :  { %v925_v28 = vadd.f32 %v1250_v60, %v920_v8 }
 0x6f4   :  { %1091 = vmatpush.bf16.msra.mxu3 %v1212_v16 }
 0x6f5   :  { %v926_v42 = vpack.c.bf16 %v925_v28, %v924_v27 }
 0x6f7   :  { %1184 = vmatmul.msk.bf16.vlgmr.msra.gmra.mxu2 %vm109_vm0, %v926_v42 }
 0x6f8   :  { %1092 = vmatpush.bf16.msra.mxu3 %v1211_v4 }
 0x6fc   :  { %1093 = vmatpush.bf16.msra.mxu3 %v1210_v11 }
 0x77a   :  { %v954_v35 = vpop.f32.mrf.mxu2 }
 0x77b   :  { %v1781_v37 = vadd.f32 %v1251_v34, %v954_v35 }
 0x77d   :  { %v1784_v40 = vmul.f32 %v967_v36, %v1781_v37 }
 0x77f   :  { %v970_v41 = vmul.f32 %v1784_v40, %v1784_v40 }
 0x781   :  { %v971_v6 = vmin.f32 %v970_v41, 16.0 }
 0x782   :  { %v956_v44 = vpop.f32.mrf.mxu2 }
 0x783   :  { %v972_v43 = vmul.f32 2.1237322e-06, %v971_v6  ;;  %v983_v46 = vmul.f32 3.8918573e-05, %v971_v6  ;;  %v1788_v23 = vadd.f32 %v1251_v34, %v956_v44 }
 0x785   :  { %v973_v45 = vadd.f32 0.00028619796, %v972_v43  ;;  %v984_v47 = vadd.f32 0.001143296, %v983_v46  ;;  %v1791_v48 = vmul.f32 %v967_v36, %v1788_v23 }
 0x787   :  { %v985_v50 = vmul.f32 %v984_v47, %v971_v6  ;;  %v1010_v38 = vmul.f32 %v1791_v48, %v1791_v48  ;;  %v974_v51 = vmul.f32 %v973_v45, %v971_v6 }
 0x789   :  { %v986_v13 = vadd.f32 0.014752088, %v985_v50  ;;  %v1011_v0 = vmin.f32 %v1010_v38, 16.0  ;;  %v975_v2 = vadd.f32 0.0036580483, %v974_v51 }
 0x78b   :  { %v987_v52 = vmul.f32 %v986_v13, %v971_v6  ;;  %v1012_v22 = vmul.f32 2.1237322e-06, %v1011_v0  ;;  %v1023_v54 = vmul.f32 3.8918573e-05, %v1011_v0  ;;  %v976_v58 = vmul.f32 %v975_v2, %v971_v6 }
 0x78d   :  { %v988_v21 = vadd.f32 0.112945676, %v987_v52  ;;  %v1013_v55 = vadd.f32 0.00028619796, %v1012_v22  ;;  %v1024_v25 = vadd.f32 0.001143296, %v1023_v54 }
 0x78e   :  { %v977_v5 = vadd.f32 0.05243302, %v976_v58 }
 0x78f   :  { %v989_v39 = vmul.f32 %v988_v21, %v971_v6  ;;  %v1014_v56 = vmul.f32 %v1013_v55, %v1011_v0  ;;  %v1025_v57 = vmul.f32 %v1024_v25, %v1011_v0  ;;  %v959_v21 = vmul.f32 0.5, %v1781_v37  ;;  %v1252_v37 = vld [vmem:[%s1838_s12] ss:$0 sm:$0xff] }
 0x790   :  { %v978_v17 = vmul.f32 %v977_v5, %v971_v6  ;;  %v960_v55 = vmul.f32 0.5, %v1788_v23 }
 0x791   :  { %v990_v59 = vadd.f32 0.4994258, %v989_v39  ;;  %v1015_v62 = vadd.f32 0.0036580483, %v1014_v56  ;;  %v1026_v63 = vadd.f32 0.014752088, %v1025_v57 }
 0x792   :  { %v979_v60 = vadd.f32 0.18741608, %v978_v17 }
 0x793   :  { %v991_v3 = vmul.f32 %v990_v59, %v971_v6  ;;  %v1027_v1 = vmul.f32 %v1026_v63, %v1011_v0  ;;  %v1016_v9 = vmul.f32 %v1015_v62, %v1011_v0 }
 0x794   :  { %v980_v28 = vmul.f32 %v979_v60, %v971_v6 }
 0x795   :  { %v992_v7 = vadd.f32 1.0, %v991_v3  ;;  %v1028_v53 = vadd.f32 0.112945676, %v1027_v1  ;;  %v1017_v10 = vadd.f32 0.05243302, %v1016_v9 }
 0x796   :  { %v981_v32 = vadd.f32 1.1283791, %v980_v28 }
 0x797   :  { %1297 = vrcp.f32 %v992_v7  ;;  %v1029_v12 = vmul.f32 %v1028_v53, %v1011_v0  ;;  %v1018_v26 = vmul.f32 %v1017_v10, %v1011_v0  ;;  %v1004_v29 = vand.u32 2147483648, %v992_v7 }
 0x798   :  { %v1002_v31 = vand.u32 2147483647, %v992_v7  ;;  %vm998_vm11 = vweird.f32 %v992_v7  ;;  %v982_v43 = vmul.f32 %v981_v32, %v1784_v40 }
 0x799   :  { %v1030_v18 = vadd.f32 0.4994258, %v1029_v12  ;;  %v1019_v30 = vadd.f32 0.18741608, %v1018_v26  ;;  %v1005_v35 = vor.u32 1.1754944e-38, %v1004_v29 }
 0x79a   :  { %vm1003_vm13 = vcmp.eq.f32.partialorder %v1002_v31, 8.507059e+37 }
 0x79b   :  { %v1031_v19 = vmul.f32 %v1030_v18, %v1011_v0  ;;  %v1020_v36 = vmul.f32 %v1019_v30, %v1011_v0 }
 0x79d   :  { %v1298_v20 = vpop.eup %1297  ;;  %v1032_v8 = vadd.f32 1.0, %v1031_v19  ;;  %v1021_v6 = vadd.f32 1.1283791, %v1020_v36 }
 0x79e   :  { %v994_v24 = vmul.f32 %v1298_v20, %v992_v7  ;;  %vm999_vm10 = vweird.f32 %v1298_v20 }
 0x79f   :  { %1299 = vrcp.f32 %v1032_v8  ;;  %vm1000_vm12 = vmor %vm998_vm11, %vm999_vm10  ;;  %v1044_v45 = vand.u32 2147483648, %v1032_v8  ;;  %v1042_v38 = vand.u32 2147483647, %v1032_v8  ;;  %vm1038_vm15 = vweird.f32 %v1032_v8 }
 0x7a0   :  { %v995_v27 = vsub.f32 1.0, %v994_v24  ;;  %v1022_v22 = vmul.f32 %v1021_v6, %v1791_v48 }
 0x7a1   :  { %v1045_v13 = vor.u32 1.1754944e-38, %v1044_v45  ;;  %vm1043_vm1 = vcmp.eq.f32.partialorder %v1042_v38, 8.507059e+37 }
 0x7a2   :  { %v996_v42 = vmul.f32 %v1298_v20, %v995_v27 }
 0x7a4   :  { %v997_v15 = vadd.f32 %v1298_v20, %v996_v42 }
 0x7a5   :  { %v1300_v33 = vpop.eup %1299 }
 0x7a6   :  { %v1001_v34 = vsel %vm1000_vm12, %v1298_v20, %v997_v15  ;;  %v1034_v41 = vmul.f32 %v1300_v33, %v1032_v8  ;;  %vm1039_vm14 = vweird.f32 %v1300_v33 }
 0x7a7   :  { %v1006_v44 = vsel %vm1003_vm13, %v1005_v35, %v1001_v34  ;;  %vm1040_vm9 = vmor %vm1038_vm15, %vm1039_vm14 }
 0x7a8   :  { %v1035_v46 = vsub.f32 1.0, %v1034_v41  ;;  %v1007_v47 = vmul.f32 %v1006_v44, %v982_v43 }
 0x7aa   :  { %v1036_v50 = vmul.f32 %v1300_v33, %v1035_v46  ;;  %v1185_v52 = vclamps-f32 %v1007_v47, 1.0 }
 0x7ac   :  { %v1037_v51 = vadd.f32 %v1300_v33, %v1036_v50  ;;  %v1050_v2 = vadd.f32 1.0, %v1185_v52 }
 0x7ae   :  { %v1041_v0 = vsel %vm1040_vm9, %v1300_v33, %v1037_v51  ;;  %v1052_v39 = vmul.f32 %v1050_v2, %v959_v21 }
 0x7af   :  { %v1046_v54 = vsel %vm1043_vm1, %v1045_v13, %v1041_v0 }
 0x7b0   :  { %v1047_v14 = vmul.f32 %v1046_v54, %v1022_v22 }
 0x7b2   :  { %v1186_v40 = vclamps-f32 %v1047_v14, 1.0 }
 0x7b4   :  { %v1051_v25 = vadd.f32 1.0, %v1186_v40 }
 0x7b6   :  { %v1053_v56 = vmul.f32 %v1051_v25, %v960_v55 }
 0x7b8   :  { %v1054_v16 = vpack.c.bf16 %v1053_v56, %v1052_v39 }
 0x7ba   :  { %1203 = vmatmul.msk.bf16.vlgmr.msra.gmra.mxu3 %vm1082_vm8, %v1054_v16 }
 0x83d   :  { %v1095_v23 = vpop.f32.mrf.mxu3 }
 0x83e   :  { %v1096_v48 = vadd.f32 %v1252_v37, %v1095_v23 }
 0x840   :  { %v1100_v57 = vadd.f32 %v1096_v48, %v1754_v61 }
 0x842   :  { %1102 = vst.msk [vmem:[#allocation7] sm:$0xff] %vm109_vm0, %v1100_v57 }
 0x845   :  { %v1097_v58 = vpop.f32.mrf.mxu3 }
 0x846   :  { %v1098_v59 = vadd.f32 %v1252_v37, %v1097_v58 }
 0x848   :  { %v1101_v62 = vadd.f32 %v1098_v59, %v1759_v49 }
 0x84a   :  { %1103 = vst.msk [vmem:[#allocation7 + $0x8] sm:$0xff] %vm109_vm0, %v1101_v62 }
 0x84b   :  { %1116 = dma.vmem_to_hbm [thread:$0]  %s1109_s24, 256, %s1111_s14, [#allocation4], %s1419_s20, %s1419_s20, %s1414_s4  }
 0x84c   :  { %1401 = dma.done.wait [#allocation4], 256  }
 0x84d   :  { %1402 = vsyncadd [#allocation4], 4294967040 }
 0x84e   :  { %1403 = dma.done.wait [#allocation9], 256  }
 0x84f   :  { %1404 = vsyncadd [#allocation9], 4294967040 }
 0x850   :  { %1138 = vsyncpa [#allocation3], 1 }
 0x851   :  { %1139 = vsyncpa [#allocation6], 1 }
 0x852   :  { %1140 = vsyncpa [#allocation4], 1 }
 0x853   :  { %1141 = vsyncpa [#allocation9], 1 }

</bundles_post_ra>
